<compile_context>
chip_gen: v5e
topology: v5e:2x2
jax: 0.10.0
libtpu: 0.0.40
codegen_flags: <defaults>
</compile_context>

<pallas_src>
import math

import jax
import jax.numpy as jnp
from jax.experimental import pallas as pl
from jax.experimental.pallas import tpu as pltpu

# ----------------------------- config ---------------------------------------
BATCH = 2
SEQ = 8
HIDDEN = 32
NUM_HEADS = 2
HEAD_DIM = HIDDEN // NUM_HEADS
NUM_LAYERS = 2
INTERMEDIATE = 64
VOCAB = 100
VOCAB_PAD = 128          # word-embedding table padded to 128 rows (lane-friendly)
TYPE_VOCAB = 2
MAX_POS = 16
NUM_CLASSES = 3
OUT_PAD = 128            # lane-dense padded logits width
LN_EPS = 1e-12


# ----------------------------- kernel helpers --------------------------------
def _layernorm(x, g, b):
    """LayerNorm over the last axis (f32 statistics)."""
    mu = jnp.mean(x, axis=-1, keepdims=True)
    xc = x - mu
    var = jnp.mean(xc * xc, axis=-1, keepdims=True)
    return xc * jax.lax.rsqrt(var + LN_EPS) * g + b


def _mm(a, b):
    """MXU matmul: bf16 operands, f32 accumulation."""
    return jnp.dot(a.astype(jnp.bfloat16), b.astype(jnp.bfloat16),
                   preferred_element_type=jnp.float32)


# ----------------------------- fused BERT kernel -----------------------------
def _bert_kernel(ids_ref, tts_ref, mask_ref,
                 word_ref, posb_ref, gvec_ref,
                 wqkv_ref, wo_ref, ff1w_ref, ff2w_ref, lvec_ref,
                 poolw_ref, c1w_ref, c2w_ref, c3w_ref,
                 out_ref):
    BS = BATCH * SEQ
    H, nH, Dh, S, I = HIDDEN, NUM_HEADS, HEAD_DIM, SEQ, INTERMEDIATE

    gv = gvec_ref[...]                                              # (8, 512) f32
    # gv rows: 0 emb_ln_g | 1 emb_ln_b | 2 type0 | 3 type1 | 4 pool_b
    #          5 c1_b(512) | 6 c2_b(128) | 7 c3_b(padded 128)

    # ---- embeddings (fused; word gather via bf16 one-hot matmul) ----
    # TODO(synk): at real vocab sizes (30k) replace the one-hot matmul with a
    # scalar-prefetched per-row gather from the embedding table.
    ids = ids_ref[...]                                              # (BS, 1) int32
    vocab_iota = jax.lax.broadcasted_iota(jnp.int32, (BS, VOCAB_PAD), 1)
    onehot = (ids == vocab_iota).astype(jnp.bfloat16)               # exact 0/1 in bf16
    x = jnp.dot(onehot, word_ref[...], preferred_element_type=jnp.float32)

    x = x + posb_ref[...]                                           # position bias (BS, H)

    tt = tts_ref[...]                                               # (BS, 1) int32
    t0 = jnp.broadcast_to(gv[2:3, :H], (BS, H))
    t1 = jnp.broadcast_to(gv[3:4, :H], (BS, H))
    x = x + jnp.where(jnp.broadcast_to(tt == 0, (BS, H)), t0, t1)

    x = _layernorm(x, gv[0:1, :H], gv[1:2, :H])                     # (BS, H)

    add_mask = mask_ref[...]                                        # (BS, BS) f32, block-diag

    for l in range(NUM_LAYERS):
        lv = lvec_ref[l]                                            # (8, 128) f32
        # lv rows: 0 b_qkv(96) | 1 o_b | 2 ln1_g | 3 ln1_b
        #          4 ff1_b(64) | 5 ff2_b | 6 ln2_g | 7 ln2_b

        # ---- fused QKV projection: one (BS,H)x(H,3H) matmul ----
        # (1/sqrt(Dh) scale is pre-folded into the Q columns / Q bias.)
        qkv = _mm(x, wqkv_ref[l]) + lv[0:1, :3 * H]                 # (BS, 3H)

        # ---- per-head attention over the full (BS, BS) slab ----
        ctx_heads = []
        for h in range(nH):
            q_h = qkv[:, h * Dh:(h + 1) * Dh]                       # (BS, Dh)
            k_h = qkv[:, H + h * Dh:H + (h + 1) * Dh]               # (BS, Dh)
            v_h = qkv[:, 2 * H + h * Dh:2 * H + (h + 1) * Dh]       # (BS, Dh)
            # q @ k^T without an explicit transpose (contract the Dh axes).
            s = jax.lax.dot_general(
                q_h.astype(jnp.bfloat16), k_h.astype(jnp.bfloat16),
                dimension_numbers=(((1,), (1,)), ((), ())),
                preferred_element_type=jnp.float32)                 # (BS, BS)
            s = s + add_mask
            s = s - jnp.max(s, axis=-1, keepdims=True)
            p = jnp.exp(s)
            p = p * pl.reciprocal(jnp.sum(p, axis=-1, keepdims=True),
                                  approx=True)
            ctx_heads.append(_mm(p, v_h))                           # (BS, Dh)
        ctx = jnp.concatenate(ctx_heads, axis=-1)                   # (BS, H), merge_heads

        # ---- single output projection for all heads ----
        attn = _mm(ctx, wo_ref[l]) + lv[1:2, :H]                    # (BS, H)
        x = _layernorm(x + attn, lv[2:3, :H], lv[3:4, :H])

        # ---- feed-forward (intermediate never leaves VMEM) ----
        hdn = _mm(x, ff1w_ref[l]) + lv[4:5, :I]                     # (BS, I)
        # TODO(synk): HF BertModel default is exact erf-GELU; tanh approximation used here.
        hdn = 0.5 * hdn * (1.0 + jnp.tanh(
            0.7978845608028654 * (hdn + 0.044715 * hdn * hdn * hdn)))
        ff = _mm(hdn, ff2w_ref[l]) + lv[5:6, :H]                    # (BS, H)
        x = _layernorm(x + ff, lv[6:7, :H], lv[7:8, :H])

    # ---- CLS-row selection via a 0/1 selection matmul (no gather/concat) ----
    row_i = jax.lax.broadcasted_iota(jnp.int32, (8, BS), 0)
    col_i = jax.lax.broadcasted_iota(jnp.int32, (8, BS), 1)
    sel = jnp.logical_and(col_i == row_i * S, row_i < BATCH).astype(jnp.bfloat16)
    cls = jnp.dot(sel, x.astype(jnp.bfloat16),
                  preferred_element_type=jnp.float32)               # (8, H); rows >= B are 0

    # ---- pooler + classifier head (Dropout is identity at inference) ----
    pooled = jnp.tanh(_mm(cls, poolw_ref[...]) + gv[4:5, :H])       # (8, H)
    hc = jnp.maximum(_mm(pooled, c1w_ref[...]) + gv[5:6, :], 0.0)   # (8, 512)
    hc = jnp.maximum(_mm(hc, c2w_ref[...]) + gv[6:7, :128], 0.0)    # (8, 128)
    logits = _mm(hc, c3w_ref[...]) + gv[7:8, :OUT_PAD]              # (8, 128) lane-dense
    out_ref[...] = logits.astype(out_ref.dtype)


# ----------------------------- parameters ------------------------------------
def init_params(key):
    def _w(k, shape, scale=0.02):
        return scale * jax.random.normal(k, shape, dtype=jnp.float32)

    keys = iter(jax.random.split(key, 64))
    p = {
        "word_emb": _w(next(keys), (VOCAB, HIDDEN)),
        "pos_emb": _w(next(keys), (MAX_POS, HIDDEN)),
        "type_emb": _w(next(keys), (TYPE_VOCAB, HIDDEN)),
        "emb_ln_g": jnp.ones((1, HIDDEN), jnp.float32),
        "emb_ln_b": jnp.zeros((1, HIDDEN), jnp.float32),
        "layers": [],
    }
    for _ in range(NUM_LAYERS):
        p["layers"].append({
            "q_w": _w(next(keys), (HIDDEN, HIDDEN)), "q_b": jnp.zeros((1, HIDDEN), jnp.float32),
            "k_w": _w(next(keys), (HIDDEN, HIDDEN)), "k_b": jnp.zeros((1, HIDDEN), jnp.float32),
            "v_w": _w(next(keys), (HIDDEN, HIDDEN)), "v_b": jnp.zeros((1, HIDDEN), jnp.float32),
            "o_w": _w(next(keys), (HIDDEN, HIDDEN)), "o_b": jnp.zeros((1, HIDDEN), jnp.float32),
            "ln1_g": jnp.ones((1, HIDDEN), jnp.float32), "ln1_b": jnp.zeros((1, HIDDEN), jnp.float32),
            "ff1_w": _w(next(keys), (HIDDEN, INTERMEDIATE)), "ff1_b": jnp.zeros((1, INTERMEDIATE), jnp.float32),
            "ff2_w": _w(next(keys), (INTERMEDIATE, HIDDEN)), "ff2_b": jnp.zeros((1, HIDDEN), jnp.float32),
            "ln2_g": jnp.ones((1, HIDDEN), jnp.float32), "ln2_b": jnp.zeros((1, HIDDEN), jnp.float32),
        })
    p["pool_w"] = _w(next(keys), (HIDDEN, HIDDEN)); p["pool_b"] = jnp.zeros((1, HIDDEN), jnp.float32)
    p["c1_w"] = _w(next(keys), (HIDDEN, 512)); p["c1_b"] = jnp.zeros((1, 512), jnp.float32)
    p["c2_w"] = _w(next(keys), (512, 128));    p["c2_b"] = jnp.zeros((1, 128), jnp.float32)
    p["c3_w"] = _w(next(keys), (128, NUM_CLASSES)); p["c3_b"] = jnp.zeros((1, NUM_CLASSES), jnp.float32)
    return p


def pack_params(p):
    """Repack HF-style params into few, kernel-friendly slabs (done once, outside jit)."""
    H, I = HIDDEN, INTERMEDIATE
    scale = 1.0 / math.sqrt(HEAD_DIM)

    def row(v, width):
        v = jnp.asarray(v, jnp.float32).reshape(1, -1)
        return jnp.pad(v, ((0, 0), (0, width - v.shape[1])))

    wqkv, wo, ff1w, ff2w, lvecs = [], [], [], [], []
    for l in p["layers"]:
        # Fold the 1/sqrt(Dh) attention scale into the Q projection.
        wqkv.append(jnp.concatenate([l["q_w"] * scale, l["k_w"], l["v_w"]], axis=1))   # (H, 3H)
        wo.append(l["o_w"])
        ff1w.append(l["ff1_w"])
        ff2w.append(l["ff2_w"])
        b_qkv = jnp.concatenate([l["q_b"] * scale, l["k_b"], l["v_b"]], axis=1)        # (1, 3H)
        lvecs.append(jnp.concatenate([
            row(b_qkv, 128), row(l["o_b"], 128),
            row(l["ln1_g"], 128), row(l["ln1_b"], 128),
            row(l["ff1_b"], 128), row(l["ff2_b"], 128),
            row(l["ln2_g"], 128), row(l["ln2_b"], 128)], axis=0))                      # (8, 128)

    word_pad = jnp.pad(p["word_emb"], ((0, VOCAB_PAD - VOCAB), (0, 0)))                # (128, H)
    c3w_pad = jnp.pad(p["c3_w"], ((0, 0), (0, OUT_PAD - NUM_CLASSES)))                 # (128, 128)

    gvec = jnp.concatenate([
        row(p["emb_ln_g"], 512), row(p["emb_ln_b"], 512),
        row(p["type_emb"][0], 512), row(p["type_emb"][1], 512),
        row(p["pool_b"], 512), row(p["c1_b"], 512),
        row(p["c2_b"], 512), row(p["c3_b"], 512)], axis=0)                             # (8, 512)

    bf = lambda a: a.astype(jnp.bfloat16)   # matmul weights pre-cast to bf16
    return dict(
        word_emb=bf(word_pad),
        pos_bias=jnp.tile(p["pos_emb"][:SEQ], (BATCH, 1)),                             # (B*S, H) f32
        gvec=gvec,
        wqkv=bf(jnp.stack(wqkv)),     # (L, H, 3H)
        wo=bf(jnp.stack(wo)),         # (L, H, H)
        ff1w=bf(jnp.stack(ff1w)),     # (L, H, I)
        ff2w=bf(jnp.stack(ff2w)),     # (L, I, H)
        lvec=jnp.stack(lvecs),        # (L, 8, 128) f32
        pool_w=bf(p["pool_w"]), c1_w=bf(p["c1_w"]),
        c2_w=bf(p["c2_w"]), c3_w=bf(c3w_pad),
    )


# ----------------------------- forward ---------------------------------------
def forward(packed, input_ids, attention_mask, token_type_ids):
    B, S = input_ids.shape
    BS = B * S
    ids = input_ids.reshape(BS, 1).astype(jnp.int32)
    tts = token_type_ids.reshape(BS, 1).astype(jnp.int32)

    # Block-diagonal additive attention mask over the flattened (BS, BS) slab:
    # a query may only attend to non-padded keys of its own batch element.
    bid = jnp.repeat(jnp.arange(B, dtype=jnp.int32), S)
    same_batch = bid[:, None] == bid[None, :]
    key_valid = (attention_mask.reshape(BS).astype(jnp.int32) > 0)[None, :]
    add_mask = jnp.where(same_batch & key_valid, 0.0, -1e9).astype(jnp.float32)

    # Single invocation (no grid): every operand is brought whole into VMEM and
    # the full forward pass runs in one kernel (total footprint << 1 MiB).
    out = pl.pallas_call(
        _bert_kernel,
        out_shape=jax.ShapeDtypeStruct((8, OUT_PAD), jnp.float32),   # lane-dense output slab
        compiler_params=pltpu.CompilerParams(vmem_limit_bytes=32 * 1024 * 1024),
    )(ids, tts, add_mask,
      packed["word_emb"], packed["pos_bias"], packed["gvec"],
      packed["wqkv"], packed["wo"], packed["ff1w"], packed["ff2w"], packed["lvec"],
      packed["pool_w"], packed["c1_w"], packed["c2_w"], packed["c3_w"])
    return out[:B, :NUM_CLASSES]


# ----------------------------- main -------------------------------------------
if __name__ == "__main__":
    key = jax.random.PRNGKey(0)
    k_param, k_ids, k_types = jax.random.split(key, 3)

    params = init_params(k_param)
    packed = pack_params(params)

    input_ids = jax.random.randint(k_ids, (BATCH, SEQ), 0, VOCAB, dtype=jnp.int32)
    attention_mask = jnp.ones((BATCH, SEQ), jnp.int32).at[1, SEQ - 2:].set(0)
    token_type_ids = jax.random.randint(k_types, (BATCH, SEQ), 0, TYPE_VOCAB, dtype=jnp.int32)

    logits = jax.jit(forward)(packed, input_ids, attention_mask, token_type_ids)
    logits = jax.block_until_ready(logits)

    assert logits.shape == (BATCH, NUM_CLASSES)
    assert bool(jnp.all(jnp.isfinite(logits)))
    print("KERNEL_OK")
</pallas_src>

<mosaic_0001>
module attributes {stable_mosaic.version = 11 : i64} {
  func.func @_bert_kernel(%arg0: memref<16x1xi32, #tpu.memory_space<vmem>>, %arg1: memref<16x1xi32, #tpu.memory_space<vmem>>, %arg2: memref<16x16xf32, #tpu.memory_space<vmem>>, %arg3: memref<128x32xbf16, #tpu.memory_space<vmem>>, %arg4: memref<16x32xf32, #tpu.memory_space<vmem>>, %arg5: memref<8x512xf32, #tpu.memory_space<vmem>>, %arg6: memref<2x32x96xbf16, #tpu.memory_space<vmem>>, %arg7: memref<2x32x32xbf16, #tpu.memory_space<vmem>>, %arg8: memref<2x32x64xbf16, #tpu.memory_space<vmem>>, %arg9: memref<2x64x32xbf16, #tpu.memory_space<vmem>>, %arg10: memref<2x8x128xf32, #tpu.memory_space<vmem>>, %arg11: memref<32x32xbf16, #tpu.memory_space<vmem>>, %arg12: memref<32x512xbf16, #tpu.memory_space<vmem>>, %arg13: memref<512x128xbf16, #tpu.memory_space<vmem>>, %arg14: memref<128x128xbf16, #tpu.memory_space<vmem>>, %arg15: memref<8x128xf32, #tpu.memory_space<vmem>>) attributes {dimension_semantics = [], scalar_prefetch = 0 : i64, scratch_operands = 0 : i64, tpu.core_type = #tpu.core_type<tc>} {
    %c0 = arith.constant 0 : index
    %c0_0 = arith.constant 0 : index
    %0 = vector.load %arg5[%c0, %c0_0] : memref<8x512xf32, #tpu.memory_space<vmem>>, vector<8x512xf32>
    %c0_1 = arith.constant 0 : index
    %c0_2 = arith.constant 0 : index
    %1 = vector.load %arg0[%c0_1, %c0_2] : memref<16x1xi32, #tpu.memory_space<vmem>>, vector<16x1xi32>
    %2 = tpu.iota {dimensions = array<i32: 1>} : vector<16x128xi32>
    %3 = vector.broadcast %1 : vector<16x1xi32> to vector<16x128xi32>
    %4 = arith.cmpi eq, %3, %2 : vector<16x128xi32>
    %5 = arith.extui %4 : vector<16x128xi1> to vector<16x128xi32>
    %6 = arith.sitofp %5 : vector<16x128xi32> to vector<16x128xf32>
    %7 = arith.truncf %6 : vector<16x128xf32> to vector<16x128xbf16>
    %c0_3 = arith.constant 0 : index
    %c0_4 = arith.constant 0 : index
    %8 = vector.load %arg3[%c0_3, %c0_4] : memref<128x32xbf16, #tpu.memory_space<vmem>>, vector<128x32xbf16>
    %cst = arith.constant dense<0.000000e+00> : vector<16x32xf32>
    %9 = tpu.matmul %7, %8, %cst {dimension_numbers = #tpu.dot_dimension_numbers<[1], [0], [0], [1], [0, 0, 1, 1], [], []>} : vector<16x128xbf16>, vector<128x32xbf16>, vector<16x32xf32> -> vector<16x32xf32>
    %c0_5 = arith.constant 0 : index
    %c0_6 = arith.constant 0 : index
    %10 = vector.load %arg4[%c0_5, %c0_6] : memref<16x32xf32, #tpu.memory_space<vmem>>, vector<16x32xf32>
    %11 = arith.addf %9, %10 : vector<16x32xf32>
    %c0_7 = arith.constant 0 : index
    %c0_8 = arith.constant 0 : index
    %12 = vector.load %arg1[%c0_7, %c0_8] : memref<16x1xi32, #tpu.memory_space<vmem>>, vector<16x1xi32>
    %13 = vector.extract_strided_slice %0 {offsets = [2, 0], sizes = [1, 32], strides = [1, 1]} : vector<8x512xf32> to vector<1x32xf32>
    %14 = vector.shape_cast %13 : vector<1x32xf32> to vector<1x32xf32>
    %15 = vector.broadcast %14 : vector<1x32xf32> to vector<16x32xf32>
    %16 = vector.extract_strided_slice %0 {offsets = [3, 0], sizes = [1, 32], strides = [1, 1]} : vector<8x512xf32> to vector<1x32xf32>
    %17 = vector.shape_cast %16 : vector<1x32xf32> to vector<1x32xf32>
    %18 = vector.broadcast %17 : vector<1x32xf32> to vector<16x32xf32>
    %c0_i32 = arith.constant 0 : i32
    %19 = vector.broadcast %c0_i32 : i32 to vector<16x1xi32>
    %20 = arith.cmpi eq, %12, %19 : vector<16x1xi32>
    %21 = vector.shape_cast %20 : vector<16x1xi1> to vector<16x1xi1>
    %22 = vector.broadcast %21 : vector<16x1xi1> to vector<16x32xi1>
    %23 = arith.select %22, %15, %18 : vector<16x32xi1>, vector<16x32xf32>
    %24 = arith.addf %11, %23 : vector<16x32xf32>
    %25 = vector.extract_strided_slice %0 {offsets = [0, 0], sizes = [1, 32], strides = [1, 1]} : vector<8x512xf32> to vector<1x32xf32>
    %26 = vector.extract_strided_slice %0 {offsets = [1, 0], sizes = [1, 32], strides = [1, 1]} : vector<8x512xf32> to vector<1x32xf32>
    %cst_9 = arith.constant dense<0.000000e+00> : vector<16xf32>
    %27 = vector.multi_reduction <add>, %24, %cst_9 [1] : vector<16x32xf32> to vector<16xf32>
    %28 = vector.shape_cast %27 : vector<16xf32> to vector<16x1xf32>
    %cst_10 = arith.constant 3.200000e+01 : f32
    %29 = vector.broadcast %cst_10 : f32 to vector<16x1xf32>
    %30 = arith.divf %28, %29 : vector<16x1xf32>
    %31 = vector.broadcast %30 : vector<16x1xf32> to vector<16x32xf32>
    %32 = arith.subf %24, %31 : vector<16x32xf32>
    %33 = arith.mulf %32, %32 : vector<16x32xf32>
    %cst_11 = arith.constant dense<0.000000e+00> : vector<16xf32>
    %34 = vector.multi_reduction <add>, %33, %cst_11 [1] : vector<16x32xf32> to vector<16xf32>
    %35 = vector.shape_cast %34 : vector<16xf32> to vector<16x1xf32>
    %cst_12 = arith.constant 3.200000e+01 : f32
    %36 = vector.broadcast %cst_12 : f32 to vector<16x1xf32>
    %37 = arith.divf %35, %36 : vector<16x1xf32>
    %cst_13 = arith.constant 9.99999996E-13 : f32
    %38 = vector.broadcast %cst_13 : f32 to vector<16x1xf32>
    %39 = arith.addf %37, %38 : vector<16x1xf32>
    %40 = math.rsqrt %39 : vector<16x1xf32>
    %41 = vector.broadcast %40 : vector<16x1xf32> to vector<16x32xf32>
    %42 = arith.mulf %32, %41 : vector<16x32xf32>
    %43 = vector.broadcast %25 : vector<1x32xf32> to vector<16x32xf32>
    %44 = arith.mulf %42, %43 : vector<16x32xf32>
    %45 = vector.broadcast %26 : vector<1x32xf32> to vector<16x32xf32>
    %46 = arith.addf %44, %45 : vector<16x32xf32>
    %c0_14 = arith.constant 0 : index
    %c0_15 = arith.constant 0 : index
    %47 = vector.load %arg2[%c0_14, %c0_15] : memref<16x16xf32, #tpu.memory_space<vmem>>, vector<16x16xf32>
    %c0_16 = arith.constant 0 : index
    %c0_17 = arith.constant 0 : index
    %c0_18 = arith.constant 0 : index
    %48 = vector.load %arg10[%c0_16, %c0_17, %c0_18] : memref<2x8x128xf32, #tpu.memory_space<vmem>>, vector<1x8x128xf32>
    %49 = vector.shape_cast %48 : vector<1x8x128xf32> to vector<8x128xf32>
    %c0_19 = arith.constant 0 : index
    %c0_20 = arith.constant 0 : index
    %c0_21 = arith.constant 0 : index
    %50 = vector.load %arg6[%c0_19, %c0_20, %c0_21] : memref<2x32x96xbf16, #tpu.memory_space<vmem>>, vector<1x32x96xbf16>
    %51 = vector.shape_cast %50 : vector<1x32x96xbf16> to vector<32x96xbf16>
    %52 = arith.truncf %46 : vector<16x32xf32> to vector<16x32xbf16>
    %cst_22 = arith.constant dense<0.000000e+00> : vector<16x96xf32>
    %53 = tpu.matmul %52, %51, %cst_22 {dimension_numbers = #tpu.dot_dimension_numbers<[1], [0], [0], [1], [0, 0, 1, 1], [], []>} : vector<16x32xbf16>, vector<32x96xbf16>, vector<16x96xf32> -> vector<16x96xf32>
    %54 = vector.extract_strided_slice %49 {offsets = [0, 0], sizes = [1, 96], strides = [1, 1]} : vector<8x128xf32> to vector<1x96xf32>
    %55 = vector.broadcast %54 : vector<1x96xf32> to vector<16x96xf32>
    %56 = arith.addf %53, %55 : vector<16x96xf32>
    %57 = vector.extract_strided_slice %56 {offsets = [0, 0], sizes = [16, 16], strides = [1, 1]} : vector<16x96xf32> to vector<16x16xf32>
    %58 = vector.extract_strided_slice %56 {offsets = [0, 32], sizes = [16, 16], strides = [1, 1]} : vector<16x96xf32> to vector<16x16xf32>
    %59 = vector.extract_strided_slice %56 {offsets = [0, 64], sizes = [16, 16], strides = [1, 1]} : vector<16x96xf32> to vector<16x16xf32>
    %60 = arith.truncf %57 : vector<16x16xf32> to vector<16x16xbf16>
    %61 = arith.truncf %58 : vector<16x16xf32> to vector<16x16xbf16>
    %cst_23 = arith.constant dense<0.000000e+00> : vector<16x16xf32>
    %62 = tpu.matmul %60, %61, %cst_23 {dimension_numbers = #tpu.dot_dimension_numbers<[1], [1], [0], [0], [0, 0, 1, 0], [], []>} : vector<16x16xbf16>, vector<16x16xbf16>, vector<16x16xf32> -> vector<16x16xf32>
    %63 = arith.addf %62, %47 : vector<16x16xf32>
    %cst_24 = arith.constant dense<0xFF800000> : vector<16xf32>
    %64 = vector.multi_reduction <maximumf>, %63, %cst_24 [1] : vector<16x16xf32> to vector<16xf32>
    %65 = vector.shape_cast %64 : vector<16xf32> to vector<16x1xf32>
    %66 = vector.broadcast %65 : vector<16x1xf32> to vector<16x16xf32>
    %67 = arith.subf %63, %66 : vector<16x16xf32>
    %68 = math.exp %67 : vector<16x16xf32>
    %cst_25 = arith.constant dense<0.000000e+00> : vector<16xf32>
    %69 = vector.multi_reduction <add>, %68, %cst_25 [1] : vector<16x16xf32> to vector<16xf32>
    %70 = vector.shape_cast %69 : vector<16xf32> to vector<16x1xf32>
    %71 = tpu.reciprocal %70 {approx = true} : vector<16x1xf32> -> vector<16x1xf32>
    %72 = vector.broadcast %71 : vector<16x1xf32> to vector<16x16xf32>
    %73 = arith.mulf %68, %72 : vector<16x16xf32>
    %74 = arith.truncf %73 : vector<16x16xf32> to vector<16x16xbf16>
    %75 = arith.truncf %59 : vector<16x16xf32> to vector<16x16xbf16>
    %cst_26 = arith.constant dense<0.000000e+00> : vector<16x16xf32>
    %76 = tpu.matmul %74, %75, %cst_26 {dimension_numbers = #tpu.dot_dimension_numbers<[1], [0], [0], [1], [0, 0, 1, 1], [], []>} : vector<16x16xbf16>, vector<16x16xbf16>, vector<16x16xf32> -> vector<16x16xf32>
    %77 = vector.extract_strided_slice %56 {offsets = [0, 16], sizes = [16, 16], strides = [1, 1]} : vector<16x96xf32> to vector<16x16xf32>
    %78 = vector.extract_strided_slice %56 {offsets = [0, 48], sizes = [16, 16], strides = [1, 1]} : vector<16x96xf32> to vector<16x16xf32>
    %79 = vector.extract_strided_slice %56 {offsets = [0, 80], sizes = [16, 16], strides = [1, 1]} : vector<16x96xf32> to vector<16x16xf32>
    %80 = arith.truncf %77 : vector<16x16xf32> to vector<16x16xbf16>
    %81 = arith.truncf %78 : vector<16x16xf32> to vector<16x16xbf16>
    %cst_27 = arith.constant dense<0.000000e+00> : vector<16x16xf32>
    %82 = tpu.matmul %80, %81, %cst_27 {dimension_numbers = #tpu.dot_dimension_numbers<[1], [1], [0], [0], [0, 0, 1, 0], [], []>} : vector<16x16xbf16>, vector<16x16xbf16>, vector<16x16xf32> -> vector<16x16xf32>
    %83 = arith.addf %82, %47 : vector<16x16xf32>
    %cst_28 = arith.constant dense<0xFF800000> : vector<16xf32>
    %84 = vector.multi_reduction <maximumf>, %83, %cst_28 [1] : vector<16x16xf32> to vector<16xf32>
    %85 = vector.shape_cast %84 : vector<16xf32> to vector<16x1xf32>
    %86 = vector.broadcast %85 : vector<16x1xf32> to vector<16x16xf32>
    %87 = arith.subf %83, %86 : vector<16x16xf32>
    %88 = math.exp %87 : vector<16x16xf32>
    %cst_29 = arith.constant dense<0.000000e+00> : vector<16xf32>
    %89 = vector.multi_reduction <add>, %88, %cst_29 [1] : vector<16x16xf32> to vector<16xf32>
    %90 = vector.shape_cast %89 : vector<16xf32> to vector<16x1xf32>
    %91 = tpu.reciprocal %90 {approx = true} : vector<16x1xf32> -> vector<16x1xf32>
    %92 = vector.broadcast %91 : vector<16x1xf32> to vector<16x16xf32>
    %93 = arith.mulf %88, %92 : vector<16x16xf32>
    %94 = arith.truncf %93 : vector<16x16xf32> to vector<16x16xbf16>
    %95 = arith.truncf %79 : vector<16x16xf32> to vector<16x16xbf16>
    %cst_30 = arith.constant dense<0.000000e+00> : vector<16x16xf32>
    %96 = tpu.matmul %94, %95, %cst_30 {dimension_numbers = #tpu.dot_dimension_numbers<[1], [0], [0], [1], [0, 0, 1, 1], [], []>} : vector<16x16xbf16>, vector<16x16xbf16>, vector<16x16xf32> -> vector<16x16xf32>
    %97 = tpu.concatenate %76, %96 in 1 : vector<16x16xf32>, vector<16x16xf32> -> vector<16x32xf32>
    %c0_31 = arith.constant 0 : index
    %c0_32 = arith.constant 0 : index
    %c0_33 = arith.constant 0 : index
    %98 = vector.load %arg7[%c0_31, %c0_32, %c0_33] : memref<2x32x32xbf16, #tpu.memory_space<vmem>>, vector<1x32x32xbf16>
    %99 = vector.shape_cast %98 : vector<1x32x32xbf16> to vector<32x32xbf16>
    %100 = arith.truncf %97 : vector<16x32xf32> to vector<16x32xbf16>
    %cst_34 = arith.constant dense<0.000000e+00> : vector<16x32xf32>
    %101 = tpu.matmul %100, %99, %cst_34 {dimension_numbers = #tpu.dot_dimension_numbers<[1], [0], [0], [1], [0, 0, 1, 1], [], []>} : vector<16x32xbf16>, vector<32x32xbf16>, vector<16x32xf32> -> vector<16x32xf32>
    %102 = vector.extract_strided_slice %49 {offsets = [1, 0], sizes = [1, 32], strides = [1, 1]} : vector<8x128xf32> to vector<1x32xf32>
    %103 = vector.broadcast %102 : vector<1x32xf32> to vector<16x32xf32>
    %104 = arith.addf %101, %103 : vector<16x32xf32>
    %105 = arith.addf %46, %104 : vector<16x32xf32>
    %106 = vector.extract_strided_slice %49 {offsets = [2, 0], sizes = [1, 32], strides = [1, 1]} : vector<8x128xf32> to vector<1x32xf32>
    %107 = vector.extract_strided_slice %49 {offsets = [3, 0], sizes = [1, 32], strides = [1, 1]} : vector<8x128xf32> to vector<1x32xf32>
    %cst_35 = arith.constant dense<0.000000e+00> : vector<16xf32>
    %108 = vector.multi_reduction <add>, %105, %cst_35 [1] : vector<16x32xf32> to vector<16xf32>
    %109 = vector.shape_cast %108 : vector<16xf32> to vector<16x1xf32>
    %cst_36 = arith.constant 3.200000e+01 : f32
    %110 = vector.broadcast %cst_36 : f32 to vector<16x1xf32>
    %111 = arith.divf %109, %110 : vector<16x1xf32>
    %112 = vector.broadcast %111 : vector<16x1xf32> to vector<16x32xf32>
    %113 = arith.subf %105, %112 : vector<16x32xf32>
    %114 = arith.mulf %113, %113 : vector<16x32xf32>
    %cst_37 = arith.constant dense<0.000000e+00> : vector<16xf32>
    %115 = vector.multi_reduction <add>, %114, %cst_37 [1] : vector<16x32xf32> to vector<16xf32>
    %116 = vector.shape_cast %115 : vector<16xf32> to vector<16x1xf32>
    %cst_38 = arith.constant 3.200000e+01 : f32
    %117 = vector.broadcast %cst_38 : f32 to vector<16x1xf32>
    %118 = arith.divf %116, %117 : vector<16x1xf32>
    %cst_39 = arith.constant 9.99999996E-13 : f32
    %119 = vector.broadcast %cst_39 : f32 to vector<16x1xf32>
    %120 = arith.addf %118, %119 : vector<16x1xf32>
    %121 = math.rsqrt %120 : vector<16x1xf32>
    %122 = vector.broadcast %121 : vector<16x1xf32> to vector<16x32xf32>
    %123 = arith.mulf %113, %122 : vector<16x32xf32>
    %124 = vector.broadcast %106 : vector<1x32xf32> to vector<16x32xf32>
    %125 = arith.mulf %123, %124 : vector<16x32xf32>
    %126 = vector.broadcast %107 : vector<1x32xf32> to vector<16x32xf32>
    %127 = arith.addf %125, %126 : vector<16x32xf32>
    %c0_40 = arith.constant 0 : index
    %c0_41 = arith.constant 0 : index
    %c0_42 = arith.constant 0 : index
    %128 = vector.load %arg8[%c0_40, %c0_41, %c0_42] : memref<2x32x64xbf16, #tpu.memory_space<vmem>>, vector<1x32x64xbf16>
    %129 = vector.shape_cast %128 : vector<1x32x64xbf16> to vector<32x64xbf16>
    %130 = arith.truncf %127 : vector<16x32xf32> to vector<16x32xbf16>
    %cst_43 = arith.constant dense<0.000000e+00> : vector<16x64xf32>
    %131 = tpu.matmul %130, %129, %cst_43 {dimension_numbers = #tpu.dot_dimension_numbers<[1], [0], [0], [1], [0, 0, 1, 1], [], []>} : vector<16x32xbf16>, vector<32x64xbf16>, vector<16x64xf32> -> vector<16x64xf32>
    %132 = vector.extract_strided_slice %49 {offsets = [4, 0], sizes = [1, 64], strides = [1, 1]} : vector<8x128xf32> to vector<1x64xf32>
    %133 = vector.broadcast %132 : vector<1x64xf32> to vector<16x64xf32>
    %134 = arith.addf %131, %133 : vector<16x64xf32>
    %cst_44 = arith.constant 5.000000e-01 : f32
    %135 = vector.broadcast %cst_44 : f32 to vector<16x64xf32>
    %136 = arith.mulf %135, %134 : vector<16x64xf32>
    %cst_45 = arith.constant 4.471500e-02 : f32
    %137 = vector.broadcast %cst_45 : f32 to vector<16x64xf32>
    %138 = arith.mulf %137, %134 : vector<16x64xf32>
    %139 = arith.mulf %138, %134 : vector<16x64xf32>
    %140 = arith.mulf %139, %134 : vector<16x64xf32>
    %141 = arith.addf %134, %140 : vector<16x64xf32>
    %cst_46 = arith.constant 0.797884583 : f32
    %142 = vector.broadcast %cst_46 : f32 to vector<16x64xf32>
    %143 = arith.mulf %142, %141 : vector<16x64xf32>
    %144 = math.tanh %143 : vector<16x64xf32>
    %cst_47 = arith.constant 1.000000e+00 : f32
    %145 = vector.broadcast %cst_47 : f32 to vector<16x64xf32>
    %146 = arith.addf %145, %144 : vector<16x64xf32>
    %147 = arith.mulf %136, %146 : vector<16x64xf32>
    %c0_48 = arith.constant 0 : index
    %c0_49 = arith.constant 0 : index
    %c0_50 = arith.constant 0 : index
    %148 = vector.load %arg9[%c0_48, %c0_49, %c0_50] : memref<2x64x32xbf16, #tpu.memory_space<vmem>>, vector<1x64x32xbf16>
    %149 = vector.shape_cast %148 : vector<1x64x32xbf16> to vector<64x32xbf16>
    %150 = arith.truncf %147 : vector<16x64xf32> to vector<16x64xbf16>
    %cst_51 = arith.constant dense<0.000000e+00> : vector<16x32xf32>
    %151 = tpu.matmul %150, %149, %cst_51 {dimension_numbers = #tpu.dot_dimension_numbers<[1], [0], [0], [1], [0, 0, 1, 1], [], []>} : vector<16x64xbf16>, vector<64x32xbf16>, vector<16x32xf32> -> vector<16x32xf32>
    %152 = vector.extract_strided_slice %49 {offsets = [5, 0], sizes = [1, 32], strides = [1, 1]} : vector<8x128xf32> to vector<1x32xf32>
    %153 = vector.broadcast %152 : vector<1x32xf32> to vector<16x32xf32>
    %154 = arith.addf %151, %153 : vector<16x32xf32>
    %155 = arith.addf %127, %154 : vector<16x32xf32>
    %156 = vector.extract_strided_slice %49 {offsets = [6, 0], sizes = [1, 32], strides = [1, 1]} : vector<8x128xf32> to vector<1x32xf32>
    %157 = vector.extract_strided_slice %49 {offsets = [7, 0], sizes = [1, 32], strides = [1, 1]} : vector<8x128xf32> to vector<1x32xf32>
    %cst_52 = arith.constant dense<0.000000e+00> : vector<16xf32>
    %158 = vector.multi_reduction <add>, %155, %cst_52 [1] : vector<16x32xf32> to vector<16xf32>
    %159 = vector.shape_cast %158 : vector<16xf32> to vector<16x1xf32>
    %cst_53 = arith.constant 3.200000e+01 : f32
    %160 = vector.broadcast %cst_53 : f32 to vector<16x1xf32>
    %161 = arith.divf %159, %160 : vector<16x1xf32>
    %162 = vector.broadcast %161 : vector<16x1xf32> to vector<16x32xf32>
    %163 = arith.subf %155, %162 : vector<16x32xf32>
    %164 = arith.mulf %163, %163 : vector<16x32xf32>
    %cst_54 = arith.constant dense<0.000000e+00> : vector<16xf32>
    %165 = vector.multi_reduction <add>, %164, %cst_54 [1] : vector<16x32xf32> to vector<16xf32>
    %166 = vector.shape_cast %165 : vector<16xf32> to vector<16x1xf32>
    %cst_55 = arith.constant 3.200000e+01 : f32
    %167 = vector.broadcast %cst_55 : f32 to vector<16x1xf32>
    %168 = arith.divf %166, %167 : vector<16x1xf32>
    %cst_56 = arith.constant 9.99999996E-13 : f32
    %169 = vector.broadcast %cst_56 : f32 to vector<16x1xf32>
    %170 = arith.addf %168, %169 : vector<16x1xf32>
    %171 = math.rsqrt %170 : vector<16x1xf32>
    %172 = vector.broadcast %171 : vector<16x1xf32> to vector<16x32xf32>
    %173 = arith.mulf %163, %172 : vector<16x32xf32>
    %174 = vector.broadcast %156 : vector<1x32xf32> to vector<16x32xf32>
    %175 = arith.mulf %173, %174 : vector<16x32xf32>
    %176 = vector.broadcast %157 : vector<1x32xf32> to vector<16x32xf32>
    %177 = arith.addf %175, %176 : vector<16x32xf32>
    %c1 = arith.constant 1 : index
    %c0_57 = arith.constant 0 : index
    %c0_58 = arith.constant 0 : index
    %178 = vector.load %arg10[%c1, %c0_57, %c0_58] : memref<2x8x128xf32, #tpu.memory_space<vmem>>, vector<1x8x128xf32>
    %179 = vector.shape_cast %178 : vector<1x8x128xf32> to vector<8x128xf32>
    %c1_59 = arith.constant 1 : index
    %c0_60 = arith.constant 0 : index
    %c0_61 = arith.constant 0 : index
    %180 = vector.load %arg6[%c1_59, %c0_60, %c0_61] : memref<2x32x96xbf16, #tpu.memory_space<vmem>>, vector<1x32x96xbf16>
    %181 = vector.shape_cast %180 : vector<1x32x96xbf16> to vector<32x96xbf16>
    %182 = arith.truncf %177 : vector<16x32xf32> to vector<16x32xbf16>
    %cst_62 = arith.constant dense<0.000000e+00> : vector<16x96xf32>
    %183 = tpu.matmul %182, %181, %cst_62 {dimension_numbers = #tpu.dot_dimension_numbers<[1], [0], [0], [1], [0, 0, 1, 1], [], []>} : vector<16x32xbf16>, vector<32x96xbf16>, vector<16x96xf32> -> vector<16x96xf32>
    %184 = vector.extract_strided_slice %179 {offsets = [0, 0], sizes = [1, 96], strides = [1, 1]} : vector<8x128xf32> to vector<1x96xf32>
    %185 = vector.broadcast %184 : vector<1x96xf32> to vector<16x96xf32>
    %186 = arith.addf %183, %185 : vector<16x96xf32>
    %187 = vector.extract_strided_slice %186 {offsets = [0, 0], sizes = [16, 16], strides = [1, 1]} : vector<16x96xf32> to vector<16x16xf32>
    %188 = vector.extract_strided_slice %186 {offsets = [0, 32], sizes = [16, 16], strides = [1, 1]} : vector<16x96xf32> to vector<16x16xf32>
    %189 = vector.extract_strided_slice %186 {offsets = [0, 64], sizes = [16, 16], strides = [1, 1]} : vector<16x96xf32> to vector<16x16xf32>
    %190 = arith.truncf %187 : vector<16x16xf32> to vector<16x16xbf16>
    %191 = arith.truncf %188 : vector<16x16xf32> to vector<16x16xbf16>
    %cst_63 = arith.constant dense<0.000000e+00> : vector<16x16xf32>
    %192 = tpu.matmul %190, %191, %cst_63 {dimension_numbers = #tpu.dot_dimension_numbers<[1], [1], [0], [0], [0, 0, 1, 0], [], []>} : vector<16x16xbf16>, vector<16x16xbf16>, vector<16x16xf32> -> vector<16x16xf32>
    %193 = arith.addf %192, %47 : vector<16x16xf32>
    %cst_64 = arith.constant dense<0xFF800000> : vector<16xf32>
    %194 = vector.multi_reduction <maximumf>, %193, %cst_64 [1] : vector<16x16xf32> to vector<16xf32>
    %195 = vector.shape_cast %194 : vector<16xf32> to vector<16x1xf32>
    %196 = vector.broadcast %195 : vector<16x1xf32> to vector<16x16xf32>
    %197 = arith.subf %193, %196 : vector<16x16xf32>
    %198 = math.exp %197 : vector<16x16xf32>
    %cst_65 = arith.constant dense<0.000000e+00> : vector<16xf32>
    %199 = vector.multi_reduction <add>, %198, %cst_65 [1] : vector<16x16xf32> to vector<16xf32>
    %200 = vector.shape_cast %199 : vector<16xf32> to vector<16x1xf32>
    %201 = tpu.reciprocal %200 {approx = true} : vector<16x1xf32> -> vector<16x1xf32>
    %202 = vector.broadcast %201 : vector<16x1xf32> to vector<16x16xf32>
    %203 = arith.mulf %198, %202 : vector<16x16xf32>
    %204 = arith.truncf %203 : vector<16x16xf32> to vector<16x16xbf16>
    %205 = arith.truncf %189 : vector<16x16xf32> to vector<16x16xbf16>
    %cst_66 = arith.constant dense<0.000000e+00> : vector<16x16xf32>
    %206 = tpu.matmul %204, %205, %cst_66 {dimension_numbers = #tpu.dot_dimension_numbers<[1], [0], [0], [1], [0, 0, 1, 1], [], []>} : vector<16x16xbf16>, vector<16x16xbf16>, vector<16x16xf32> -> vector<16x16xf32>
    %207 = vector.extract_strided_slice %186 {offsets = [0, 16], sizes = [16, 16], strides = [1, 1]} : vector<16x96xf32> to vector<16x16xf32>
    %208 = vector.extract_strided_slice %186 {offsets = [0, 48], sizes = [16, 16], strides = [1, 1]} : vector<16x96xf32> to vector<16x16xf32>
    %209 = vector.extract_strided_slice %186 {offsets = [0, 80], sizes = [16, 16], strides = [1, 1]} : vector<16x96xf32> to vector<16x16xf32>
    %210 = arith.truncf %207 : vector<16x16xf32> to vector<16x16xbf16>
    %211 = arith.truncf %208 : vector<16x16xf32> to vector<16x16xbf16>
    %cst_67 = arith.constant dense<0.000000e+00> : vector<16x16xf32>
    %212 = tpu.matmul %210, %211, %cst_67 {dimension_numbers = #tpu.dot_dimension_numbers<[1], [1], [0], [0], [0, 0, 1, 0], [], []>} : vector<16x16xbf16>, vector<16x16xbf16>, vector<16x16xf32> -> vector<16x16xf32>
    %213 = arith.addf %212, %47 : vector<16x16xf32>
    %cst_68 = arith.constant dense<0xFF800000> : vector<16xf32>
    %214 = vector.multi_reduction <maximumf>, %213, %cst_68 [1] : vector<16x16xf32> to vector<16xf32>
    %215 = vector.shape_cast %214 : vector<16xf32> to vector<16x1xf32>
    %216 = vector.broadcast %215 : vector<16x1xf32> to vector<16x16xf32>
    %217 = arith.subf %213, %216 : vector<16x16xf32>
    %218 = math.exp %217 : vector<16x16xf32>
    %cst_69 = arith.constant dense<0.000000e+00> : vector<16xf32>
    %219 = vector.multi_reduction <add>, %218, %cst_69 [1] : vector<16x16xf32> to vector<16xf32>
    %220 = vector.shape_cast %219 : vector<16xf32> to vector<16x1xf32>
    %221 = tpu.reciprocal %220 {approx = true} : vector<16x1xf32> -> vector<16x1xf32>
    %222 = vector.broadcast %221 : vector<16x1xf32> to vector<16x16xf32>
    %223 = arith.mulf %218, %222 : vector<16x16xf32>
    %224 = arith.truncf %223 : vector<16x16xf32> to vector<16x16xbf16>
    %225 = arith.truncf %209 : vector<16x16xf32> to vector<16x16xbf16>
    %cst_70 = arith.constant dense<0.000000e+00> : vector<16x16xf32>
    %226 = tpu.matmul %224, %225, %cst_70 {dimension_numbers = #tpu.dot_dimension_numbers<[1], [0], [0], [1], [0, 0, 1, 1], [], []>} : vector<16x16xbf16>, vector<16x16xbf16>, vector<16x16xf32> -> vector<16x16xf32>
    %227 = tpu.concatenate %206, %226 in 1 : vector<16x16xf32>, vector<16x16xf32> -> vector<16x32xf32>
    %c1_71 = arith.constant 1 : index
    %c0_72 = arith.constant 0 : index
    %c0_73 = arith.constant 0 : index
    %228 = vector.load %arg7[%c1_71, %c0_72, %c0_73] : memref<2x32x32xbf16, #tpu.memory_space<vmem>>, vector<1x32x32xbf16>
    %229 = vector.shape_cast %228 : vector<1x32x32xbf16> to vector<32x32xbf16>
    %230 = arith.truncf %227 : vector<16x32xf32> to vector<16x32xbf16>
    %cst_74 = arith.constant dense<0.000000e+00> : vector<16x32xf32>
    %231 = tpu.matmul %230, %229, %cst_74 {dimension_numbers = #tpu.dot_dimension_numbers<[1], [0], [0], [1], [0, 0, 1, 1], [], []>} : vector<16x32xbf16>, vector<32x32xbf16>, vector<16x32xf32> -> vector<16x32xf32>
    %232 = vector.extract_strided_slice %179 {offsets = [1, 0], sizes = [1, 32], strides = [1, 1]} : vector<8x128xf32> to vector<1x32xf32>
    %233 = vector.broadcast %232 : vector<1x32xf32> to vector<16x32xf32>
    %234 = arith.addf %231, %233 : vector<16x32xf32>
    %235 = arith.addf %177, %234 : vector<16x32xf32>
    %236 = vector.extract_strided_slice %179 {offsets = [2, 0], sizes = [1, 32], strides = [1, 1]} : vector<8x128xf32> to vector<1x32xf32>
    %237 = vector.extract_strided_slice %179 {offsets = [3, 0], sizes = [1, 32], strides = [1, 1]} : vector<8x128xf32> to vector<1x32xf32>
    %cst_75 = arith.constant dense<0.000000e+00> : vector<16xf32>
    %238 = vector.multi_reduction <add>, %235, %cst_75 [1] : vector<16x32xf32> to vector<16xf32>
    %239 = vector.shape_cast %238 : vector<16xf32> to vector<16x1xf32>
    %cst_76 = arith.constant 3.200000e+01 : f32
    %240 = vector.broadcast %cst_76 : f32 to vector<16x1xf32>
    %241 = arith.divf %239, %240 : vector<16x1xf32>
    %242 = vector.broadcast %241 : vector<16x1xf32> to vector<16x32xf32>
    %243 = arith.subf %235, %242 : vector<16x32xf32>
    %244 = arith.mulf %243, %243 : vector<16x32xf32>
    %cst_77 = arith.constant dense<0.000000e+00> : vector<16xf32>
    %245 = vector.multi_reduction <add>, %244, %cst_77 [1] : vector<16x32xf32> to vector<16xf32>
    %246 = vector.shape_cast %245 : vector<16xf32> to vector<16x1xf32>
    %cst_78 = arith.constant 3.200000e+01 : f32
    %247 = vector.broadcast %cst_78 : f32 to vector<16x1xf32>
    %248 = arith.divf %246, %247 : vector<16x1xf32>
    %cst_79 = arith.constant 9.99999996E-13 : f32
    %249 = vector.broadcast %cst_79 : f32 to vector<16x1xf32>
    %250 = arith.addf %248, %249 : vector<16x1xf32>
    %251 = math.rsqrt %250 : vector<16x1xf32>
    %252 = vector.broadcast %251 : vector<16x1xf32> to vector<16x32xf32>
    %253 = arith.mulf %243, %252 : vector<16x32xf32>
    %254 = vector.broadcast %236 : vector<1x32xf32> to vector<16x32xf32>
    %255 = arith.mulf %253, %254 : vector<16x32xf32>
    %256 = vector.broadcast %237 : vector<1x32xf32> to vector<16x32xf32>
    %257 = arith.addf %255, %256 : vector<16x32xf32>
    %c1_80 = arith.constant 1 : index
    %c0_81 = arith.constant 0 : index
    %c0_82 = arith.constant 0 : index
    %258 = vector.load %arg8[%c1_80, %c0_81, %c0_82] : memref<2x32x64xbf16, #tpu.memory_space<vmem>>, vector<1x32x64xbf16>
    %259 = vector.shape_cast %258 : vector<1x32x64xbf16> to vector<32x64xbf16>
    %260 = arith.truncf %257 : vector<16x32xf32> to vector<16x32xbf16>
    %cst_83 = arith.constant dense<0.000000e+00> : vector<16x64xf32>
    %261 = tpu.matmul %260, %259, %cst_83 {dimension_numbers = #tpu.dot_dimension_numbers<[1], [0], [0], [1], [0, 0, 1, 1], [], []>} : vector<16x32xbf16>, vector<32x64xbf16>, vector<16x64xf32> -> vector<16x64xf32>
    %262 = vector.extract_strided_slice %179 {offsets = [4, 0], sizes = [1, 64], strides = [1, 1]} : vector<8x128xf32> to vector<1x64xf32>
    %263 = vector.broadcast %262 : vector<1x64xf32> to vector<16x64xf32>
    %264 = arith.addf %261, %263 : vector<16x64xf32>
    %cst_84 = arith.constant 5.000000e-01 : f32
    %265 = vector.broadcast %cst_84 : f32 to vector<16x64xf32>
    %266 = arith.mulf %265, %264 : vector<16x64xf32>
    %cst_85 = arith.constant 4.471500e-02 : f32
    %267 = vector.broadcast %cst_85 : f32 to vector<16x64xf32>
    %268 = arith.mulf %267, %264 : vector<16x64xf32>
    %269 = arith.mulf %268, %264 : vector<16x64xf32>
    %270 = arith.mulf %269, %264 : vector<16x64xf32>
    %271 = arith.addf %264, %270 : vector<16x64xf32>
    %cst_86 = arith.constant 0.797884583 : f32
    %272 = vector.broadcast %cst_86 : f32 to vector<16x64xf32>
    %273 = arith.mulf %272, %271 : vector<16x64xf32>
    %274 = math.tanh %273 : vector<16x64xf32>
    %cst_87 = arith.constant 1.000000e+00 : f32
    %275 = vector.broadcast %cst_87 : f32 to vector<16x64xf32>
    %276 = arith.addf %275, %274 : vector<16x64xf32>
    %277 = arith.mulf %266, %276 : vector<16x64xf32>
    %c1_88 = arith.constant 1 : index
    %c0_89 = arith.constant 0 : index
    %c0_90 = arith.constant 0 : index
    %278 = vector.load %arg9[%c1_88, %c0_89, %c0_90] : memref<2x64x32xbf16, #tpu.memory_space<vmem>>, vector<1x64x32xbf16>
    %279 = vector.shape_cast %278 : vector<1x64x32xbf16> to vector<64x32xbf16>
    %280 = arith.truncf %277 : vector<16x64xf32> to vector<16x64xbf16>
    %cst_91 = arith.constant dense<0.000000e+00> : vector<16x32xf32>
    %281 = tpu.matmul %280, %279, %cst_91 {dimension_numbers = #tpu.dot_dimension_numbers<[1], [0], [0], [1], [0, 0, 1, 1], [], []>} : vector<16x64xbf16>, vector<64x32xbf16>, vector<16x32xf32> -> vector<16x32xf32>
    %282 = vector.extract_strided_slice %179 {offsets = [5, 0], sizes = [1, 32], strides = [1, 1]} : vector<8x128xf32> to vector<1x32xf32>
    %283 = vector.broadcast %282 : vector<1x32xf32> to vector<16x32xf32>
    %284 = arith.addf %281, %283 : vector<16x32xf32>
    %285 = arith.addf %257, %284 : vector<16x32xf32>
    %286 = vector.extract_strided_slice %179 {offsets = [6, 0], sizes = [1, 32], strides = [1, 1]} : vector<8x128xf32> to vector<1x32xf32>
    %287 = vector.extract_strided_slice %179 {offsets = [7, 0], sizes = [1, 32], strides = [1, 1]} : vector<8x128xf32> to vector<1x32xf32>
    %cst_92 = arith.constant dense<0.000000e+00> : vector<16xf32>
    %288 = vector.multi_reduction <add>, %285, %cst_92 [1] : vector<16x32xf32> to vector<16xf32>
    %289 = vector.shape_cast %288 : vector<16xf32> to vector<16x1xf32>
    %cst_93 = arith.constant 3.200000e+01 : f32
    %290 = vector.broadcast %cst_93 : f32 to vector<16x1xf32>
    %291 = arith.divf %289, %290 : vector<16x1xf32>
    %292 = vector.broadcast %291 : vector<16x1xf32> to vector<16x32xf32>
    %293 = arith.subf %285, %292 : vector<16x32xf32>
    %294 = arith.mulf %293, %293 : vector<16x32xf32>
    %cst_94 = arith.constant dense<0.000000e+00> : vector<16xf32>
    %295 = vector.multi_reduction <add>, %294, %cst_94 [1] : vector<16x32xf32> to vector<16xf32>
    %296 = vector.shape_cast %295 : vector<16xf32> to vector<16x1xf32>
    %cst_95 = arith.constant 3.200000e+01 : f32
    %297 = vector.broadcast %cst_95 : f32 to vector<16x1xf32>
    %298 = arith.divf %296, %297 : vector<16x1xf32>
    %cst_96 = arith.constant 9.99999996E-13 : f32
    %299 = vector.broadcast %cst_96 : f32 to vector<16x1xf32>
    %300 = arith.addf %298, %299 : vector<16x1xf32>
    %301 = math.rsqrt %300 : vector<16x1xf32>
    %302 = vector.broadcast %301 : vector<16x1xf32> to vector<16x32xf32>
    %303 = arith.mulf %293, %302 : vector<16x32xf32>
    %304 = vector.broadcast %286 : vector<1x32xf32> to vector<16x32xf32>
    %305 = arith.mulf %303, %304 : vector<16x32xf32>
    %306 = vector.broadcast %287 : vector<1x32xf32> to vector<16x32xf32>
    %307 = arith.addf %305, %306 : vector<16x32xf32>
    %308 = tpu.iota {dimensions = array<i32: 0>} : vector<8x16xi32>
    %309 = tpu.iota {dimensions = array<i32: 1>} : vector<8x16xi32>
    %c8_i32 = arith.constant 8 : i32
    %310 = vector.broadcast %c8_i32 : i32 to vector<8x16xi32>
    %311 = arith.muli %308, %310 : vector<8x16xi32>
    %312 = arith.cmpi eq, %309, %311 : vector<8x16xi32>
    %c2_i32 = arith.constant 2 : i32
    %313 = vector.broadcast %c2_i32 : i32 to vector<8x16xi32>
    %314 = arith.cmpi slt, %308, %313 : vector<8x16xi32>
    %315 = arith.andi %312, %314 : vector<8x16xi1>
    %316 = arith.extui %315 : vector<8x16xi1> to vector<8x16xi32>
    %317 = arith.sitofp %316 : vector<8x16xi32> to vector<8x16xf32>
    %318 = arith.truncf %317 : vector<8x16xf32> to vector<8x16xbf16>
    %319 = arith.truncf %307 : vector<16x32xf32> to vector<16x32xbf16>
    %cst_97 = arith.constant dense<0.000000e+00> : vector<8x32xf32>
    %320 = tpu.matmul %318, %319, %cst_97 {dimension_numbers = #tpu.dot_dimension_numbers<[1], [0], [0], [1], [0, 0, 1, 1], [], []>} : vector<8x16xbf16>, vector<16x32xbf16>, vector<8x32xf32> -> vector<8x32xf32>
    %c0_98 = arith.constant 0 : index
    %c0_99 = arith.constant 0 : index
    %321 = vector.load %arg11[%c0_98, %c0_99] : memref<32x32xbf16, #tpu.memory_space<vmem>>, vector<32x32xbf16>
    %322 = arith.truncf %320 : vector<8x32xf32> to vector<8x32xbf16>
    %cst_100 = arith.constant dense<0.000000e+00> : vector<8x32xf32>
    %323 = tpu.matmul %322, %321, %cst_100 {dimension_numbers = #tpu.dot_dimension_numbers<[1], [0], [0], [1], [0, 0, 1, 1], [], []>} : vector<8x32xbf16>, vector<32x32xbf16>, vector<8x32xf32> -> vector<8x32xf32>
    %324 = vector.extract_strided_slice %0 {offsets = [4, 0], sizes = [1, 32], strides = [1, 1]} : vector<8x512xf32> to vector<1x32xf32>
    %325 = vector.broadcast %324 : vector<1x32xf32> to vector<8x32xf32>
    %326 = arith.addf %323, %325 : vector<8x32xf32>
    %327 = math.tanh %326 : vector<8x32xf32>
    %c0_101 = arith.constant 0 : index
    %c0_102 = arith.constant 0 : index
    %328 = vector.load %arg12[%c0_101, %c0_102] : memref<32x512xbf16, #tpu.memory_space<vmem>>, vector<32x512xbf16>
    %329 = arith.truncf %327 : vector<8x32xf32> to vector<8x32xbf16>
    %cst_103 = arith.constant dense<0.000000e+00> : vector<8x512xf32>
    %330 = tpu.matmul %329, %328, %cst_103 {dimension_numbers = #tpu.dot_dimension_numbers<[1], [0], [0], [1], [0, 0, 1, 1], [], []>} : vector<8x32xbf16>, vector<32x512xbf16>, vector<8x512xf32> -> vector<8x512xf32>
    %331 = vector.extract_strided_slice %0 {offsets = [5, 0], sizes = [1, 512], strides = [1, 1]} : vector<8x512xf32> to vector<1x512xf32>
    %332 = vector.broadcast %331 : vector<1x512xf32> to vector<8x512xf32>
    %333 = arith.addf %330, %332 : vector<8x512xf32>
    %cst_104 = arith.constant 0.000000e+00 : f32
    %334 = vector.broadcast %cst_104 : f32 to vector<8x512xf32>
    %335 = arith.maximumf %333, %334 : vector<8x512xf32>
    %c0_105 = arith.constant 0 : index
    %c0_106 = arith.constant 0 : index
    %336 = vector.load %arg13[%c0_105, %c0_106] : memref<512x128xbf16, #tpu.memory_space<vmem>>, vector<512x128xbf16>
    %337 = arith.truncf %335 : vector<8x512xf32> to vector<8x512xbf16>
    %cst_107 = arith.constant dense<0.000000e+00> : vector<8x128xf32>
    %338 = tpu.matmul %337, %336, %cst_107 {dimension_numbers = #tpu.dot_dimension_numbers<[1], [0], [0], [1], [0, 0, 1, 1], [], []>} : vector<8x512xbf16>, vector<512x128xbf16>, vector<8x128xf32> -> vector<8x128xf32>
    %339 = vector.extract_strided_slice %0 {offsets = [6, 0], sizes = [1, 128], strides = [1, 1]} : vector<8x512xf32> to vector<1x128xf32>
    %340 = vector.broadcast %339 : vector<1x128xf32> to vector<8x128xf32>
    %341 = arith.addf %338, %340 : vector<8x128xf32>
    %cst_108 = arith.constant 0.000000e+00 : f32
    %342 = vector.broadcast %cst_108 : f32 to vector<8x128xf32>
    %343 = arith.maximumf %341, %342 : vector<8x128xf32>
    %c0_109 = arith.constant 0 : index
    %c0_110 = arith.constant 0 : index
    %344 = vector.load %arg14[%c0_109, %c0_110] : memref<128x128xbf16, #tpu.memory_space<vmem>>, vector<128x128xbf16>
    %345 = arith.truncf %343 : vector<8x128xf32> to vector<8x128xbf16>
    %cst_111 = arith.constant dense<0.000000e+00> : vector<8x128xf32>
    %346 = tpu.matmul %345, %344, %cst_111 {dimension_numbers = #tpu.dot_dimension_numbers<[1], [0], [0], [1], [0, 0, 1, 1], [], []>} : vector<8x128xbf16>, vector<128x128xbf16>, vector<8x128xf32> -> vector<8x128xf32>
    %347 = vector.extract_strided_slice %0 {offsets = [7, 0], sizes = [1, 128], strides = [1, 1]} : vector<8x512xf32> to vector<1x128xf32>
    %348 = vector.broadcast %347 : vector<1x128xf32> to vector<8x128xf32>
    %349 = arith.addf %346, %348 : vector<8x128xf32>
    %c0_112 = arith.constant 0 : index
    %c0_113 = arith.constant 0 : index
    %350 = vector.load %arg15[%c0_112, %c0_113] : memref<8x128xf32, #tpu.memory_space<vmem>>, vector<8x128xf32>
    tpu.vector_store %arg15[%c0_112, %c0_113], %349 {strides = array<i32>} : memref<8x128xf32, #tpu.memory_space<vmem>>, vector<8x128xf32>,
    return
  }
}

</mosaic_0001>

<bundles_post_ra>
// kernel: eq.8
= control target key start
LH: loop header
LB: loop body
LE: loop exit
PB: predicated region body
PF: predicated region fallthrough
CT: control target
= control target key end

     0   :  { %vm7_vm0 = vcmask 64512   ;;  %vm13_vm1 = vcmask 130112   ;;  %s39_s0 = inlined_call_operand.vmem [shape: s32[2,8], index: 0, kind: input, shape index: {}]   ;;  %s40_s1 = inlined_call_operand.vmem [shape: s32[16], index: 1, kind: output, shape index: {}]  }
   0x1   :  { %v4_v0 = vld [vmem:[%s39_s0] sm:$0x3]  ;;  %s22_s0 = smov 8  }
   0x2   :  { %5 = vst [vmem:[#allocation1] sm:$0x3] %v4_v0 }
   0x9   :  { %v10_v1 = vld [vmem:[#allocation1 + $0x1] sm:$0x1]   ;;  %v6_v2 = vld [vmem:[#allocation1] sm:$0x1]  }
   0xa   :  { %11 = vrot.lane.b32.xlu0 %v10_v1, %s22_s0  ;;  %8 = vst.msk [vmem:[#allocation0] sm:$0x1] %vm7_vm0, %v6_v2  }
  0x7c   :  { %v12_v3 = vpop.permute.xlu0 %11  }
  0x7d   :  { %14 = vst.msk [vmem:[#allocation0] sm:$0x1] %vm13_vm1, %v12_v3  }
  0x84   :  { %v17_v4 = vld [vmem:[#allocation0] sm:$0x1] }
  0x85   :  { %20 = vst [vmem:[%s40_s1] sm:$0x1] %v17_v4 }

// kernel: forward.1
= control target key start
LH: loop header
LB: loop body
LE: loop exit
PB: predicated region body
PF: predicated region fallthrough
CT: control target
= control target key end

     0   :  { %20 = vsyncpa [#allocation3], 0  ;;  %s2896_s0 = inlined_call_operand.vmem [shape: s32[16,1], index: 0, kind: input, shape index: {}]   ;;  %s2897_s1 = inlined_call_operand.vmem [shape: s32[16,1], index: 1, kind: input, shape index: {}]   ;;  %s2898_s2 = inlined_call_operand.vmem [shape: f32[16,16], index: 2, kind: input, shape index: {}]   ;;  %s2899_s3 = inlined_call_operand.vmem [shape: bf16[128,32], index: 3, kind: input, shape index: {}]   ;;  %s2900_s4 = inlined_call_operand.vmem [shape: f32[16,32], index: 4, kind: input, shape index: {}]   ;;  %s2901_s5 = inlined_call_operand.vmem [shape: f32[8,512], index: 5, kind: input, shape index: {}]   ;;  %s2902_s6 = inlined_call_operand.hbm [shape: bf16[2,32,96], index: 6, kind: input, shape index: {}]   ;;  %s2903_s7 = inlined_call_operand.hbm [shape: bf16[2,32,32], index: 7, kind: input, shape index: {}]   ;;  %s2904_s8 = inlined_call_operand.hbm [shape: bf16[2,32,64], index: 8, kind: input, shape index: {}]   ;;  %s2905_s9 = inlined_call_operand.vmem [shape: bf16[2,64,32], index: 9, kind: input, shape index: {}]   ;;  %s2906_s10 = inlined_call_operand.hbm [shape: f32[2,8,128], index: 10, kind: input, shape index: {}]   ;;  %s2907_s11 = inlined_call_operand.hbm [shape: bf16[32,32], index: 11, kind: input, shape index: {}]   ;;  %s2908_s12 = inlined_call_operand.vmem [shape: bf16[32,512], index: 12, kind: input, shape index: {}]   ;;  %s2909_s13 = inlined_call_operand.hbm [shape: bf16[512,128], index: 13, kind: input, shape index: {}]   ;;  %s2910_s14 = inlined_call_operand.vmem [shape: bf16[128,128], index: 14, kind: input, shape index: {}]   ;;  %s2911_s15 = inlined_call_operand.vmem [shape: f32[8,128], index: 15, kind: output, shape index: {}]  }
   0x1   :  { %21 = vsyncpa [#allocation5], 0 }
   0x2   :  { %22 = vsyncpa [#allocation8], 0 }
   0x3   :  { %23 = vsyncpa [#allocation11], 0  ;;  %s53_s20 = sshll.u32 %s2903_s7, 4  ;;  %s2427_s21 = smov [#allocation4]   ;;  %s54_s20 = int_to_ptr.hbm [resolvable:$true] %s53_s20 }
   0x4   :  { %s55_s22 = sshll.u32 %s2427_s21, 4  ;;  %s81_s25 = sshll.u32 %s2906_s10, 4  ;;  %s56_s22 = int_to_ptr.vmem [resolvable:$true] %s55_s22  ;;  %s82_s25 = int_to_ptr.hbm [resolvable:$true] %s81_s25 }
   0x5   :  { %s2428_s26 = smov 64   ;;  %s2429_s27 = smov 4  }
   0x6   :  { %61 = dma.hbm_to_vmem [thread:$0]  %s54_s20, 512, %s56_s22, [#allocation5], %s2428_s26, %s2428_s26, %s2429_s27  }
   0x7   :  { %s2430_s28 = smov [#allocation7]   ;;  %s2431_s30 = smov 128  }
   0x8   :  { %s83_s29 = sshll.u32 %s2430_s28, 4  ;;  %s2432_s7 = smov 8   ;;  %s84_s29 = int_to_ptr.vmem [resolvable:$true] %s83_s29 }
   0x9   :  { %89 = dma.hbm_to_vmem [thread:$0]  %s82_s25, 256, %s84_s29, [#allocation8], %s2431_s30, %s2431_s30, %s2432_s7  }
   0xa   :  { %s40_s18 = sshll.u32 %s2902_s6, 4  ;;  %s2433_s19 = smov [#allocation2]   ;;  %s41_s18 = int_to_ptr.hbm [resolvable:$true] %s40_s18 }
   0xb   :  { %s42_s10 = sshll.u32 %s2433_s19, 4  ;;  %s66_s24 = sshll.u32 %s2904_s8, 4  ;;  %s43_s10 = int_to_ptr.vmem [resolvable:$true] %s42_s10  ;;  %s67_s24 = int_to_ptr.hbm [resolvable:$true] %s66_s24 }
   0xc   :  { %48 = dma.hbm_to_vmem [thread:$0]  %s41_s18, 512, %s43_s10, [#allocation3], %s2428_s26, %s2428_s26, %s2429_s27  }
   0xd   :  { %s2434_s20 = smov [#allocation6]   ;;  %s94_s29 = sshll.u32 %s2907_s11, 4  ;;  %s95_s29 = int_to_ptr.hbm [resolvable:$true] %s94_s29 }
   0xe   :  { %s68_s22 = sshll.u32 %s2434_s20, 4  ;;  %s109_s8 = sshll.u32 %s2909_s13, 4  ;;  %s69_s22 = int_to_ptr.vmem [resolvable:$true] %s68_s22  ;;  %s110_s8 = int_to_ptr.hbm [resolvable:$true] %s109_s8 }
   0xf   :  { %74 = dma.hbm_to_vmem [thread:$0]  %s67_s24, 512, %s69_s22, [#allocation5], %s2428_s26, %s2428_s26, %s2429_s27  }
  0x10   :  { %s2435_s7 = smov [#allocation9]   ;;  %s2436_s17 = smov [#allocation10]  }
  0x11   :  { %s96_s16 = sshll.u32 %s2435_s7, 4  ;;  %s111_s11 = sshll.u32 %s2436_s17, 4  ;;  %s97_s16 = int_to_ptr.vmem [resolvable:$true] %s96_s16  ;;  %s112_s11 = int_to_ptr.vmem [resolvable:$true] %s111_s11 }
  0x12   :  { %102 = dma.hbm_to_vmem [thread:$0]  %s95_s29, 256, %s97_s16, [#allocation8], %s2428_s26, %s2428_s26, %s2429_s27  }
  0x13   :  { %117 = dma.hbm_to_vmem [thread:$0]  %s110_s8, 4096, %s112_s11, [#allocation11], %s2428_s26, %s2428_s26, %s2429_s27  }
  0x14   :  { %2419 = dma.done.wait [#allocation3], 512  }
  0x15   :  { %2420 = vsyncadd [#allocation3], 4294966784 }
  0x16   :  { %2421 = dma.done.wait [#allocation5], 1024  }
  0x17   :  { %2422 = vsyncadd [#allocation5], 4294966272 }
  0x18   :  { %2423 = dma.done.wait [#allocation8], 512  }
  0x19   :  { %2424 = vsyncadd [#allocation8], 4294966784 }
  0x1a   :  { %2425 = dma.done.wait [#allocation11], 4096  }
  0x1b   :  { %2426 = vsyncadd [#allocation11], 4294963200  ;;  %v2437_v0 = vmov 0   ;;  %v149_v1 = vld [vmem:[%s2896_s0] sm:$0xff]  ;;  %v2108_v2 = vld [vmem:[%s2899_s3 + $0x38] sm:$0xff]  ;;  %v151_v16 = vlaneseq  ;;  %vm266_vm6 = vcmask 261120  }
  0x1c   :  { %2198 = vset.pattern.permute.xlu0 %v2437_v0  ;;  %2199 = vset.pattern.permute.xlu1 %v2437_v0  ;;  %v2107_v3 = vld [vmem:[%s2899_s3 + $0x30] sm:$0xff]  ;;  %v150_v4 = vld [vmem:[%s2896_s0 + $0x8] sm:$0xff]  ;;  %v2105_v6 = vld [vmem:[%s2899_s3 + $0x20] sm:$0xff]  ;;  %v2438_v19 = vmov 1.0|1.0   ;;  %v2439_v37 = vmov 32.0  }
  0x1d   :  { %154 = vperm.xlu0 %2198, %v149_v1   ;;  %232 = vmatpush.bf16.msra.mxu0 %v2108_v2  ;;  %v2106_v5 = vld [vmem:[%s2899_s3 + $0x28] sm:$0xff]  ;;  %v2104_v7 = vld [vmem:[%s2899_s3 + $0x18] sm:$0xff]  ;;  %v2103_v8 = vld [vmem:[%s2899_s3 + $0x10] sm:$0xff]  ;;  %v2596_v17 = vand.u32 127, %v151_v16  ;;  %2210 = vrcp.f32 %v2439_v37  ;;  %s2441_s24 = smov 80   ;;  %s2442_s20 = smov 112  }
  0x1e   :  { %v2102_v9 = vld [vmem:[%s2899_s3 + $0x8] sm:$0xff]  ;;  %v2101_v10 = vld [vmem:[%s2899_s3] sm:$0xff]  ;;  %vm366_vm15 = vcmask 130048   ;;  %s2444_s6 = smov 16  }
  0x1f   :  { %v246_v11 = vld [vmem:[%s2897_s1] sm:$0xff]  ;;  %v247_v13 = vld [vmem:[%s2897_s1 + $0x8] sm:$0xff] }
  0x20   :  { %vm250_vm0 = vcmp.eq.s32.totalorder %v246_v11, 0  ;;  %vm251_vm1 = vcmp.eq.s32.totalorder %v247_v13, 0  ;;  %v2603_v20 = vld [vmem:[%s2901_s5] sm:$0xff]  ;;  %v183_v31 = vld [vmem:[%s2900_s4 + $0x8] sm:$0xff] }
  0x21   :  { %233 = vmatpush.bf16.msra.mxu0 %v2107_v3  ;;  %v252_v12 = vsel %vm250_vm0, 1, %v2437_v0  ;;  %v253_v14 = vsel %vm251_vm1, 1, %v2437_v0  ;;  %v248_v22 = vperm.slane %v2603_v20, 2  ;;  %v249_v23 = vperm.slane %v2603_v20, 3  ;;  %v182_v24 = vld [vmem:[%s2900_s4] sm:$0xff]  ;;  %v2110_v54 = vld [vmem:[#allocation2 + $0x8] sm:$0xff] }
  0x22   :  { %255 = vperm.xlu1 %2199, %v252_v12   ;;  %354 = vmatpush.bf16.msra.mxu1 %v2110_v54  ;;  %v2109_v56 = vld [vmem:[#allocation2] sm:$0xff]  ;;  %v318_v11 = vperm.slane %v2603_v20, 0  ;;  %s2440_s4 = smov 96  }
  0x23   :  { %v2211_v38 = vpop.eup %2210 }
  0x24   :  { %v274_v39 = vmul.f32 32.0, %v2211_v38  ;;  %vm278_vm8 = vweird.f32 %v2211_v38 }
  0x25   :  { %157 = vperm.xlu0 %2198, %v150_v4   ;;  %234 = vmatpush.bf16.msra.mxu0 %v2106_v5 }
  0x26   :  { %v275_v40 = vsub.f32 1.0, %v274_v39  ;;  %355 = vmatpush.bf16.msra.mxu1 %v2109_v56  ;;  %v2658_v39 = vld [vmem:[%s2898_s2 + $0x8] sm:$0xff] }
  0x28   :  { %v276_v41 = vmul.f32 %v2211_v38, %v275_v40 }
  0x29   :  { %235 = vmatpush.bf16.msra.mxu0 %v2105_v6 }
  0x2a   :  { %258 = vperm.xlu1 %2199, %v253_v14   ;;  %v277_v42 = vadd.f32 %v2211_v38, %v276_v41 }
  0x2c   :  { %v2615_v43 = vsel %vm278_vm8, %v2211_v38, %v277_v42 }
  0x2d   :  { %236 = vmatpush.bf16.msra.mxu0 %v2104_v7 }
  0x31   :  { %237 = vmatpush.bf16.msra.mxu0 %v2103_v8 }
  0x35   :  { %238 = vmatpush.bf16.msra.mxu0 %v2102_v9 }
  0x39   :  { %239 = vmatpush.bf16.msra.mxu0 %v2101_v10 }
  0x8f   :  { %v155_v15 = vpop.permute.xlu0 %154 }
  0x90   :  { %vm159_vm2 = vcmp.eq.s32.totalorder %v155_v15, %v2596_v17 }
  0x94   :  { %v256_v21 = vpop.permute.xlu1 %255 }
  0x95   :  { %vm260_vm5 = vcmp.eq.s32.totalorder %v256_v21, 1 }
  0x96   :  { %v262_v26 = vsel %vm260_vm5, %v248_v22, %v249_v23 }
  0x97   :  { %v158_v18 = vpop.permute.xlu0 %157 }
  0x98   :  { %vm160_vm3 = vcmp.eq.s32.totalorder %v158_v18, %v2596_v17  ;;  %v321_v18 = vperm.slane %v2603_v20, 1 }
  0x99   :  { %vm1788_vm4 = vmpackc.low %vm160_vm3, %vm159_vm2 }
  0x9a   :  { %1789 = vmatmul.msk.bf16.vlgmr.msra.gmra.mxu0 %vm1788_vm4, %v2438_v19 }
  0x9c   :  { %v259_v29 = vpop.permute.xlu1 %258 }
  0x9d   :  { %vm261_vm7 = vcmp.eq.s32.totalorder %v259_v29, 1 }
  0x9e   :  { %v263_v34 = vsel %vm261_vm7, %v248_v22, %v249_v23  ;;  %vm681_vm7 = vcmask 523264  }
 0x117   :  { %v241_v25 = vpop.f32.mrf.mxu0 }
 0x118   :  { %v242_v27 = vadd.f32 %v241_v25, %v182_v24  ;;  %v2632_v25 = vld [vmem:[#allocation7] sm:$0xff] }
 0x11a   :  { %v264_v28 = vadd.f32 %v262_v26, %v242_v27  ;;  %v332_v26 = vperm.slane %v2632_v25, 0 }
 0x11c   :  { %v267_v30 = vsel %vm266_vm6, %v264_v28, 0.0 }
 0x11d   :  { %268 = vadd.xlane.f32.xlu2 %v267_v30 }
 0x11f   :  { %v243_v32 = vpop.f32.mrf.mxu0 }
 0x120   :  { %v244_v33 = vadd.f32 %v243_v32, %v183_v31 }
 0x122   :  { %v265_v35 = vadd.f32 %v263_v34, %v244_v33 }
 0x124   :  { %v270_v36 = vsel %vm266_vm6, %v265_v35, 0.0 }
 0x125   :  { %271 = vadd.xlane.f32.xlu2 %v270_v36 }
 0x190   :  { %v269_v44 = vpop.xlane.xlu2 %268 }
 0x191   :  { %v280_v45 = vmul.f32 %v2615_v43, %v269_v44 }
 0x193   :  { %v282_v46 = vsub.f32 %v264_v28, %v280_v45 }
 0x195   :  { %v284_v47 = vmul.f32 %v282_v46, %v282_v46 }
 0x197   :  { %v286_v48 = vsel %vm266_vm6, %v284_v47, 0.0 }
 0x198   :  { %287 = vadd.xlane.f32.xlu0 %v286_v48  ;;  %v272_v49 = vpop.xlane.xlu2 %271 }
 0x199   :  { %v281_v50 = vmul.f32 %v2615_v43, %v272_v49 }
 0x19b   :  { %v283_v51 = vsub.f32 %v265_v35, %v281_v50  ;;  %v2651_v35 = vld [vmem:[%s2898_s2] sm:$0xff]  ;;  %s2443_s2 = smov 48  }
 0x19d   :  { %v285_v52 = vmul.f32 %v283_v51, %v283_v51 }
 0x19f   :  { %v289_v53 = vsel %vm266_vm6, %v285_v52, 0.0 }
 0x1a0   :  { %290 = vadd.xlane.f32.xlu1 %v289_v53 }
 0x20b   :  { %v288_v55 = vpop.xlane.xlu0 %287 }
 0x20c   :  { %v292_v57 = vmul.f32 %v288_v55, %v2615_v43 }
 0x20e   :  { %v294_v58 = vadd.f32 1e-12, %v292_v57 }
 0x210   :  { %2212 = vrsqrt.f32 %v294_v58  ;;  %vm302_vm10 = vweird.f32 %v294_v58 }
 0x213   :  { %v291_v59 = vpop.xlane.xlu1 %290 }
 0x214   :  { %v293_v60 = vmul.f32 %v291_v59, %v2615_v43 }
 0x216   :  { %v2213_v61 = vpop.eup %2212  ;;  %v295_v62 = vadd.f32 1e-12, %v293_v60 }
 0x217   :  { %v297_v63 = vmul.f32 %v2213_v61, %v294_v58  ;;  %vm303_vm9 = vweird.f32 %v2213_v61 }
 0x218   :  { %2214 = vrsqrt.f32 %v295_v62  ;;  %vm304_vm11 = vmor %vm302_vm10, %vm303_vm9  ;;  %vm312_vm13 = vweird.f32 %v295_v62 }
 0x219   :  { %v298_v0 = vmul.f32 %v2213_v61, %v297_v63 }
 0x21b   :  { %v299_v1 = vmul.f32 0.5, %v298_v0 }
 0x21d   :  { %v300_v2 = vsub.f32 1.5, %v299_v1 }
 0x21e   :  { %v2215_v3 = vpop.eup %2214 }
 0x21f   :  { %v301_v4 = vmul.f32 %v2213_v61, %v300_v2  ;;  %v307_v5 = vmul.f32 %v2215_v3, %v295_v62  ;;  %vm313_vm12 = vweird.f32 %v2215_v3 }
 0x220   :  { %vm314_vm14 = vmor %vm312_vm13, %vm313_vm12 }
 0x221   :  { %v308_v6 = vmul.f32 %v2215_v3, %v307_v5  ;;  %v305_v7 = vsel %vm304_vm11, %v2213_v61, %v301_v4 }
 0x222   :  { %v316_v10 = vmul.f32 %v305_v7, %v282_v46 }
 0x223   :  { %v309_v8 = vmul.f32 0.5, %v308_v6 }
 0x224   :  { %v319_v15 = vmul.f32 %v318_v11, %v316_v10 }
 0x225   :  { %v310_v9 = vsub.f32 1.5, %v309_v8 }
 0x226   :  { %v2625_v21 = vadd.f32 %v321_v18, %v319_v15 }
 0x227   :  { %v311_v12 = vmul.f32 %v2215_v3, %v310_v9 }
 0x229   :  { %v315_v13 = vsel %vm314_vm14, %v2215_v3, %v311_v12 }
 0x22a   :  { %v317_v14 = vmul.f32 %v315_v13, %v283_v51 }
 0x22c   :  { %v320_v19 = vmul.f32 %v318_v11, %v317_v14 }
 0x22e   :  { %v2627_v22 = vadd.f32 %v321_v18, %v320_v19 }
 0x230   :  { %v331_v23 = vpack.c.bf16 %v2627_v22, %v2625_v21 }
 0x232   :  { %1798 = vmatmul.msk.bf16.vlgmr.msra.gmra.mxu1 %vm266_vm6, %v331_v23 }
 0x2af   :  { %v357_v24 = vpop.f32.mrf.mxu1 }
 0x2b0   :  { %v358_v28 = vadd.f32 %v357_v24, %v332_v26 }
 0x2b7   :  { %v359_v27 = vpop.f32.mrf.mxu1 }
 0x2b8   :  { %v360_v29 = vadd.f32 %v359_v27, %v332_v26 }
 0x2ba   :  { %v2635_v30 = vpack.c.bf16 %v360_v29, %v358_v28  ;;  %v2112_v28 = vld [vmem:[#allocation4 + $0x8] sm:$0xff] }
 0x2bc   :  { %364 = vrot.lane.b32.xlu2 %v2635_v30, %s2440_s4 }
 0x2c4   :  { %432 = vrot.lane.b32.xlu2 %v2635_v30, %s2441_s24 }
 0x2cc   :  { %430 = vrot.lane.b32.xlu2 %v2635_v30, %s2442_s20 }
 0x316   :  { %v365_v20 = vpop.permute.xlu2 %364 }
 0x317   :  { %v371_v31 = vsel %vm366_vm15, %v365_v20, 0 }
 0x318   :  { %380 = vmatpush.bf16.xpose.msra.mxu2 %v371_v31 }
 0x31e   :  { %v433_v32 = vpop.permute.xlu2 %432 }
 0x31f   :  { %1799 = vmatmul.msk.bf16.vlgmr.msra.gmra.mxu2 %vm366_vm15, %v2635_v30  ;;  %v438_v33 = vsel %vm366_vm15, %v433_v32, 0 }
 0x320   :  { %447 = vmatpush.bf16.xpose.msra.mxu3 %v438_v33  ;;  %534 = vmatpush.bf16.msrb.mxu2 %v2112_v28  ;;  %v2111_v33 = vld [vmem:[#allocation4] sm:$0xff]  ;;  %v591_v28 = vperm.slane %v2632_v25, 3 }
 0x324   :  { %535 = vmatpush.bf16.msrb.mxu2 %v2111_v33  ;;  %v2117_v33 = vld [vmem:[%s2905_s9 + $0x10] sm:$0xff] }
 0x326   :  { %v431_v34 = vpop.permute.xlu2 %430 }
 0x327   :  { %1801 = vmatmul.msk.bf16.vlgmr.msra.gmra.mxu3 %vm366_vm15, %v431_v34 }
 0x3a2   :  { %v382_v36 = vpop.f32.mrf.mxu2 }
 0x3a3   :  { %v383_v37 = vadd.f32 %v382_v36, %v2651_v35 }
 0x3a5   :  { %v387_v38 = vsel %vm366_vm15, %v383_v37, -inf }
 0x3a6   :  { %388 = vmax.xlane.f32.xlu2 %v387_v38 }
 0x3aa   :  { %v384_v40 = vpop.f32.mrf.mxu2  ;;  %v449_v41 = vpop.f32.mrf.mxu3 }
 0x3ab   :  { %v385_v42 = vadd.f32 %v384_v40, %v2658_v39  ;;  %v450_v44 = vadd.f32 %v449_v41, %v2651_v35 }
 0x3ad   :  { %v390_v45 = vsel %vm366_vm15, %v385_v42, -inf  ;;  %v454_v46 = vsel %vm366_vm15, %v450_v44, -inf }
 0x3ae   :  { %391 = vmax.xlane.f32.xlu0 %v390_v45  ;;  %455 = vmax.xlane.f32.xlu1 %v454_v46 }
 0x3b2   :  { %v451_v47 = vpop.f32.mrf.mxu3 }
 0x3b3   :  { %v452_v48 = vadd.f32 %v451_v47, %v2658_v39 }
 0x3b5   :  { %v457_v49 = vsel %vm366_vm15, %v452_v48, -inf }
 0x3b6   :  { %458 = vmax.xlane.f32.xlu0 %v457_v49 }
 0x3be   :  { %477 = vrot.lane.b32.xlu2 %v2635_v30, %s2443_s2 }
 0x419   :  { %v389_v50 = vpop.xlane.xlu2 %388 }
 0x41a   :  { %v393_v51 = vsub.f32 %v383_v37, %v389_v50 }
 0x41c   :  { %v395_v52 = vmul.f32 1.442695, %v393_v51 }
 0x41e   :  { %2216 = vpow2.f32 %v395_v52 }
 0x421   :  { %v392_v53 = vpop.xlane.xlu0 %391  ;;  %v456_v54 = vpop.xlane.xlu1 %455 }
 0x422   :  { %v394_v55 = vsub.f32 %v385_v42, %v392_v53  ;;  %v460_v58 = vsub.f32 %v450_v44, %v456_v54  ;;  %v478_v14 = vpop.permute.xlu2 %477  ;;  %v512_v42 = vperm.slane %v2632_v25, 1 }
 0x424   :  { %v2217_v56 = vpop.eup %2216  ;;  %v397_v57 = vmul.f32 1.442695, %v394_v55  ;;  %v462_v60 = vmul.f32 1.442695, %v460_v58 }
 0x425   :  { %v399_v59 = vsel %vm366_vm15, %v2217_v56, 0.0 }
 0x426   :  { %2218 = vpow2.f32 %v397_v57  ;;  %400 = vadd.xlane.f32.xlu1 %v399_v59 }
 0x427   :  { %2220 = vpow2.f32 %v462_v60 }
 0x429   :  { %v459_v61 = vpop.xlane.xlu0 %458 }
 0x42a   :  { %v461_v63 = vsub.f32 %v452_v48, %v459_v61 }
 0x42c   :  { %v2219_v62 = vpop.eup %2218  ;;  %v464_v1 = vmul.f32 1.442695, %v461_v63  ;;  %v2113_v63 = vld [vmem:[#allocation6] sm:$0xff] }
 0x42d   :  { %v402_v0 = vsel %vm366_vm15, %v2219_v62, 0.0  ;;  %v2221_v2 = vpop.eup %2220 }
 0x42e   :  { %403 = vadd.xlane.f32.xlu0 %v402_v0  ;;  %2222 = vpow2.f32 %v464_v1  ;;  %v466_v3 = vsel %vm366_vm15, %v2221_v2, 0.0 }
 0x434   :  { %v2223_v4 = vpop.eup %2222 }
 0x435   :  { %v469_v5 = vsel %vm366_vm15, %v2223_v4, 0.0 }
 0x436   :  { %467 = vadd.xlane.f32.xlu0 %v466_v3 }
 0x43e   :  { %470 = vadd.xlane.f32.xlu0 %v469_v5 }
 0x43f   :  { %410 = vrot.lane.b32.xlu1 %v2635_v30, %s2428_s26 }
 0x499   :  { %v401_v7 = vpop.xlane.xlu1 %400 }
 0x4a1   :  { %v404_v6 = vpop.xlane.xlu0 %403 }
 0x4a2   :  { %2224 = vrcp.f32 %v404_v6 }
 0x4a3   :  { %2226 = vrcp.f32 %v401_v7 }
 0x4a8   :  { %v2225_v9 = vpop.eup %2224 }
 0x4a9   :  { %v468_v8 = vpop.xlane.xlu0 %467  ;;  %v2227_v10 = vpop.eup %2226  ;;  %v408_v11 = vmul.f32 %v2225_v9, %v2219_v62 }
 0x4aa   :  { %v407_v12 = vmul.f32 %v2227_v10, %v2217_v56 }
 0x4ac   :  { %v409_v18 = vpack.c.bf16 %v408_v11, %v407_v12 }
 0x4b1   :  { %v411_v13 = vpop.permute.xlu1 %410  ;;  %v471_v15 = vpop.xlane.xlu0 %470 }
 0x4b2   :  { %423 = vmatpush.bf16.msrb.mxu1 %v411_v13  ;;  %2228 = vrcp.f32 %v471_v15 }
 0x4b3   :  { %2230 = vrcp.f32 %v468_v8 }
 0x4b5   :  { %1800 = vmatmul.msk.bf16.vlgmr.msrb.gmra.mxu1 %vm366_vm15, %v409_v18 }
 0x4b6   :  { %490 = vmatpush.bf16.msra.mxu1 %v478_v14 }
 0x4b8   :  { %v2229_v19 = vpop.eup %2228 }
 0x4b9   :  { %v2231_v23 = vpop.eup %2230  ;;  %v475_v24 = vmul.f32 %v2229_v19, %v2223_v4  ;;  %v588_v19 = vperm.slane %v2632_v25, 2 }
 0x4ba   :  { %v474_v26 = vmul.f32 %v2231_v23, %v2221_v2 }
 0x4bc   :  { %v476_v27 = vpack.c.bf16 %v475_v24, %v474_v26 }
 0x4c5   :  { %1802 = vmatmul.msk.bf16.vlgmr.msra.gmra.mxu1 %vm366_vm15, %v476_v27 }
 0x532   :  { %v425_v29 = vpop.f32.mrf.mxu1 }
 0x53a   :  { %v427_v30 = vpop.f32.mrf.mxu1 }
 0x542   :  { %v492_v20 = vpop.f32.mrf.mxu1 }
 0x54a   :  { %v494_v31 = vpop.f32.mrf.mxu1 }
 0x54b   :  { %v2200_v32 = vpack.i.bf16 %v494_v31, %v492_v20 }
 0x54d   :  { %2201 = vrot.lane.b32.xlu0 %v2200_v32, %s2444_s6  ;;  %v2118_v32 = vld [vmem:[%s2905_s9 + $0x18] sm:$0xff] }
 0x54e   :  { %689 = vmatpush.bf16.msrb.mxu1 %v2118_v32 }
 0x552   :  { %690 = vmatpush.bf16.msrb.mxu1 %v2117_v33 }
 0x5bf   :  { %v2202_v34 = vpop.permute.xlu0 %2201 }
 0x5c0   :  { %v2204_v36 = vunpack.i.h.bf16 %v2202_v34  ;;  %v2203_v37 = vunpack.i.l.bf16 %v2202_v34  ;;  %v2116_v34 = vld [vmem:[%s2905_s9 + $0x8] sm:$0xff] }
 0x5c1   :  { %691 = vmatpush.bf16.msrb.mxu1 %v2116_v34 }
 0x5c2   :  { %v506_v38 = vsel %vm366_vm15, %v427_v30, %v2204_v36  ;;  %v505_v40 = vsel %vm366_vm15, %v425_v29, %v2203_v37  ;;  %v2115_v36 = vld [vmem:[%s2905_s9] sm:$0xff]  ;;  %v599_v37 = vperm.slane %v2632_v25, 4 }
 0x5c3   :  { %v511_v41 = vpack.c.bf16 %v506_v38, %v505_v40 }
 0x5c5   :  { %1811 = vmatmul.msk.bf16.vlgmr.msrb.gmra.mxu2 %vm266_vm6, %v511_v41  ;;  %692 = vmatpush.bf16.msrb.mxu1 %v2115_v36 }
 0x648   :  { %v537_v44 = vpop.f32.mrf.mxu2 }
 0x649   :  { %v538_v45 = vadd.f32 %v537_v44, %v512_v42 }
 0x64b   :  { %v542_v46 = vadd.f32 %v538_v45, %v2625_v21 }
 0x64d   :  { %v544_v47 = vsel %vm266_vm6, %v542_v46, 0.0 }
 0x64e   :  { %545 = vadd.xlane.f32.xlu1 %v544_v47 }
 0x650   :  { %v539_v48 = vpop.f32.mrf.mxu2 }
 0x651   :  { %v540_v49 = vadd.f32 %v539_v48, %v512_v42 }
 0x653   :  { %v543_v50 = vadd.f32 %v540_v49, %v2627_v22  ;;  %v2114_v22 = vld [vmem:[#allocation6 + $0x8] sm:$0xff] }
 0x654   :  { %621 = vmatpush.bf16.msrb.mxu3 %v2114_v22 }
 0x655   :  { %v547_v51 = vsel %vm266_vm6, %v543_v50, 0.0 }
 0x656   :  { %548 = vadd.xlane.f32.xlu0 %v547_v51 }
 0x658   :  { %622 = vmatpush.bf16.msrb.mxu3 %v2113_v63 }
 0x6c1   :  { %v546_v52 = vpop.xlane.xlu1 %545 }
 0x6c2   :  { %v550_v53 = vmul.f32 %v546_v52, %v2615_v43 }
 0x6c4   :  { %v552_v54 = vsub.f32 %v542_v46, %v550_v53 }
 0x6c6   :  { %v554_v55 = vmul.f32 %v552_v54, %v552_v54 }
 0x6c8   :  { %v556_v56 = vsel %vm266_vm6, %v554_v55, 0.0 }
 0x6c9   :  { %v549_v57 = vpop.xlane.xlu0 %548  ;;  %557 = vadd.xlane.f32.xlu2 %v556_v56 }
 0x6ca   :  { %v551_v21 = vmul.f32 %v549_v57, %v2615_v43 }
 0x6cc   :  { %v553_v58 = vsub.f32 %v543_v50, %v551_v21 }
 0x6ce   :  { %v555_v59 = vmul.f32 %v553_v58, %v553_v58 }
 0x6d0   :  { %v559_v60 = vsel %vm266_vm6, %v555_v59, 0.0 }
 0x6d1   :  { %560 = vadd.xlane.f32.xlu1 %v559_v60 }
 0x73c   :  { %v558_v61 = vpop.xlane.xlu2 %557 }
 0x73d   :  { %v562_v62 = vmul.f32 %v558_v61, %v2615_v43  ;;  %v656_v61 = vperm.slane %v2632_v25, 5 }
 0x73f   :  { %v564_v0 = vadd.f32 1e-12, %v562_v62 }
 0x741   :  { %2232 = vrsqrt.f32 %v564_v0  ;;  %vm572_vm1 = vweird.f32 %v564_v0 }
 0x744   :  { %v561_v1 = vpop.xlane.xlu1 %560 }
 0x745   :  { %v563_v2 = vmul.f32 %v561_v1, %v2615_v43 }
 0x747   :  { %v2233_v3 = vpop.eup %2232  ;;  %v565_v4 = vadd.f32 1e-12, %v563_v2 }
 0x748   :  { %v567_v5 = vmul.f32 %v2233_v3, %v564_v0  ;;  %vm573_vm0 = vweird.f32 %v2233_v3 }
 0x749   :  { %2234 = vrsqrt.f32 %v565_v4  ;;  %vm574_vm2 = vmor %vm572_vm1, %vm573_vm0  ;;  %vm582_vm4 = vweird.f32 %v565_v4 }
 0x74a   :  { %v568_v6 = vmul.f32 %v2233_v3, %v567_v5 }
 0x74c   :  { %v569_v7 = vmul.f32 0.5, %v568_v6 }
 0x74e   :  { %v570_v8 = vsub.f32 1.5, %v569_v7 }
 0x74f   :  { %v2235_v9 = vpop.eup %2234 }
 0x750   :  { %v571_v10 = vmul.f32 %v2233_v3, %v570_v8  ;;  %v577_v11 = vmul.f32 %v2235_v9, %v565_v4  ;;  %vm583_vm3 = vweird.f32 %v2235_v9 }
 0x751   :  { %vm584_vm5 = vmor %vm582_vm4, %vm583_vm3 }
 0x752   :  { %v578_v12 = vmul.f32 %v2235_v9, %v577_v11  ;;  %v575_v13 = vsel %vm574_vm2, %v2233_v3, %v571_v10 }
 0x753   :  { %v586_v18 = vmul.f32 %v575_v13, %v552_v54 }
 0x754   :  { %v579_v14 = vmul.f32 0.5, %v578_v12 }
 0x755   :  { %v589_v27 = vmul.f32 %v588_v19, %v586_v18  ;;  %v2120_v18 = vld [vmem:[#allocation2 + $0x18] sm:$0xff] }
 0x756   :  { %v580_v15 = vsub.f32 1.5, %v579_v14  ;;  %781 = vmatpush.bf16.msra.mxu2 %v2120_v18 }
 0x757   :  { %v592_v30 = vadd.f32 %v591_v28, %v589_v27 }
 0x758   :  { %v581_v23 = vmul.f32 %v2235_v9, %v580_v15 }
 0x75a   :  { %v585_v24 = vsel %vm584_vm5, %v2235_v9, %v581_v23 }
 0x75b   :  { %v587_v26 = vmul.f32 %v585_v24, %v553_v58 }
 0x75d   :  { %v590_v29 = vmul.f32 %v588_v19, %v587_v26  ;;  %v2119_v26 = vld [vmem:[#allocation2 + $0x10] sm:$0xff] }
 0x75e   :  { %782 = vmatpush.bf16.msra.mxu2 %v2119_v26 }
 0x75f   :  { %v593_v20 = vadd.f32 %v591_v28, %v590_v29 }
 0x761   :  { %v598_v31 = vpack.c.bf16 %v593_v20, %v592_v30 }
 0x763   :  { %1820 = vmatmul.msk.bf16.vlgmr.msrb.gmra.mxu3 %vm266_vm6, %v598_v31 }
 0x7e6   :  { %v624_v38 = vpop.f32.mrf.mxu3 }
 0x7e7   :  { %v625_v40 = vadd.f32 %v624_v38, %v599_v37 }
 0x7e9   :  { %v631_v41 = vmul.f32 0.044715, %v625_v40  ;;  %v629_v57 = vmul.f32 0.5, %v625_v40 }
 0x7eb   :  { %v633_v42 = vmul.f32 %v631_v41, %v625_v40 }
 0x7ed   :  { %v635_v44 = vmul.f32 %v633_v42, %v625_v40 }
 0x7ee   :  { %v626_v45 = vpop.f32.mrf.mxu3 }
 0x7ef   :  { %v637_v46 = vadd.f32 %v635_v44, %v625_v40  ;;  %v627_v47 = vadd.f32 %v626_v45, %v599_v37  ;;  %v745_v44 = vperm.slane %v2632_v25, 6 }
 0x7f1   :  { %v632_v48 = vmul.f32 0.044715, %v627_v47  ;;  %v639_v49 = vmul.f32 0.7978846, %v637_v46  ;;  %v630_v21 = vmul.f32 0.5, %v627_v47 }
 0x7f3   :  { %v634_v50 = vmul.f32 %v632_v48, %v627_v47  ;;  %2236 = vtanh.f32 %v639_v49  ;;  %v748_v48 = vperm.slane %v2632_v25, 7 }
 0x7f5   :  { %v636_v51 = vmul.f32 %v634_v50, %v627_v47 }
 0x7f7   :  { %v638_v52 = vadd.f32 %v636_v51, %v627_v47 }
 0x7f9   :  { %v640_v53 = vmul.f32 0.7978846, %v638_v52  ;;  %v2237_v54 = vpop.eup %2236 }
 0x7fa   :  { %v643_v55 = vadd.f32 1.0, %v2237_v54 }
 0x7fb   :  { %2238 = vtanh.f32 %v640_v53 }
 0x7fc   :  { %v645_v59 = vmul.f32 %v643_v55, %v629_v57 }
 0x801   :  { %v2239_v56 = vpop.eup %2238 }
 0x802   :  { %v644_v58 = vadd.f32 1.0, %v2239_v56  ;;  %v2726_v56 = vld [vmem:[#allocation7 + $0x8] sm:$0xff] }
 0x803   :  { %v759_v57 = vperm.slane %v2726_v56, 0 }
 0x804   :  { %v646_v60 = vmul.f32 %v644_v58, %v630_v21 }
 0x806   :  { %v655_v22 = vpack.c.bf16 %v646_v60, %v645_v59 }
 0x808   :  { %1837 = vmatmul.msk.bf16.vlgmr.msrb.gmra.mxu1 %vm681_vm7, %v655_v22 }
 0x885   :  { %v694_v62 = vpop.f32.mrf.mxu1 }
 0x886   :  { %v695_v63 = vadd.f32 %v694_v62, %v656_v61 }
 0x888   :  { %v699_v0 = vadd.f32 %v695_v63, %v592_v30 }
 0x88a   :  { %v701_v1 = vsel %vm266_vm6, %v699_v0, 0.0 }
 0x88b   :  { %702 = vadd.xlane.f32.xlu1 %v701_v1 }
 0x88d   :  { %v696_v2 = vpop.f32.mrf.mxu1 }
 0x88e   :  { %v697_v3 = vadd.f32 %v696_v2, %v656_v61 }
 0x890   :  { %v700_v4 = vadd.f32 %v697_v3, %v593_v20 }
 0x892   :  { %v704_v5 = vsel %vm266_vm6, %v700_v4, 0.0 }
 0x893   :  { %705 = vadd.xlane.f32.xlu1 %v704_v5 }
 0x8fe   :  { %v703_v6 = vpop.xlane.xlu1 %702 }
 0x8ff   :  { %v707_v7 = vmul.f32 %v703_v6, %v2615_v43 }
 0x901   :  { %v709_v8 = vsub.f32 %v699_v0, %v707_v7 }
 0x903   :  { %v711_v9 = vmul.f32 %v709_v8, %v709_v8 }
 0x905   :  { %v713_v10 = vsel %vm266_vm6, %v711_v9, 0.0 }
 0x906   :  { %714 = vadd.xlane.f32.xlu0 %v713_v10  ;;  %v706_v11 = vpop.xlane.xlu1 %705 }
 0x907   :  { %v708_v12 = vmul.f32 %v706_v11, %v2615_v43 }
 0x909   :  { %v710_v13 = vsub.f32 %v700_v4, %v708_v12 }
 0x90b   :  { %v712_v14 = vmul.f32 %v710_v13, %v710_v13 }
 0x90d   :  { %v716_v15 = vsel %vm266_vm6, %v712_v14, 0.0 }
 0x90e   :  { %717 = vadd.xlane.f32.xlu2 %v716_v15 }
 0x979   :  { %v715_v19 = vpop.xlane.xlu0 %714 }
 0x97a   :  { %v719_v23 = vmul.f32 %v715_v19, %v2615_v43 }
 0x97c   :  { %v721_v24 = vadd.f32 1e-12, %v719_v23 }
 0x97e   :  { %2240 = vrsqrt.f32 %v721_v24  ;;  %vm729_vm9 = vweird.f32 %v721_v24 }
 0x981   :  { %v718_v27 = vpop.xlane.xlu2 %717 }
 0x982   :  { %v720_v28 = vmul.f32 %v718_v27, %v2615_v43 }
 0x984   :  { %v2241_v29 = vpop.eup %2240  ;;  %v722_v30 = vadd.f32 1e-12, %v720_v28 }
 0x985   :  { %v724_v20 = vmul.f32 %v2241_v29, %v721_v24  ;;  %vm730_vm8 = vweird.f32 %v2241_v29 }
 0x986   :  { %2242 = vrsqrt.f32 %v722_v30  ;;  %vm731_vm10 = vmor %vm729_vm9, %vm730_vm8  ;;  %vm739_vm12 = vweird.f32 %v722_v30 }
 0x987   :  { %v725_v31 = vmul.f32 %v2241_v29, %v724_v20 }
 0x989   :  { %v726_v32 = vmul.f32 0.5, %v725_v31 }
 0x98b   :  { %v727_v33 = vsub.f32 1.5, %v726_v32 }
 0x98c   :  { %v2243_v34 = vpop.eup %2242 }
 0x98d   :  { %v728_v36 = vmul.f32 %v2241_v29, %v727_v33  ;;  %v734_v37 = vmul.f32 %v2243_v34, %v722_v30  ;;  %vm740_vm11 = vweird.f32 %v2243_v34 }
 0x98e   :  { %vm741_vm13 = vmor %vm739_vm12, %vm740_vm11 }
 0x98f   :  { %v735_v38 = vmul.f32 %v2243_v34, %v734_v37  ;;  %v732_v40 = vsel %vm731_vm10, %v2241_v29, %v728_v36 }
 0x990   :  { %v743_v45 = vmul.f32 %v732_v40, %v709_v8 }
 0x991   :  { %v736_v41 = vmul.f32 0.5, %v735_v38 }
 0x992   :  { %v746_v49 = vmul.f32 %v745_v44, %v743_v45 }
 0x993   :  { %v737_v42 = vsub.f32 1.5, %v736_v41 }
 0x994   :  { %v2719_v52 = vadd.f32 %v748_v48, %v746_v49 }
 0x995   :  { %v738_v46 = vmul.f32 %v2243_v34, %v737_v42 }
 0x997   :  { %v742_v47 = vsel %vm741_vm13, %v2243_v34, %v738_v46 }
 0x998   :  { %v744_v50 = vmul.f32 %v742_v47, %v710_v13 }
 0x99a   :  { %v747_v51 = vmul.f32 %v745_v44, %v744_v50 }
 0x99c   :  { %v2721_v53 = vadd.f32 %v748_v48, %v747_v51 }
 0x99e   :  { %v758_v54 = vpack.c.bf16 %v2721_v53, %v2719_v52 }
 0x9a0   :  { %1846 = vmatmul.msk.bf16.vlgmr.msra.gmra.mxu2 %vm266_vm6, %v758_v54 }
 0xa23   :  { %v784_v55 = vpop.f32.mrf.mxu2 }
 0xa24   :  { %v785_v58 = vadd.f32 %v784_v55, %v759_v57 }
 0xa2b   :  { %v786_v21 = vpop.f32.mrf.mxu2 }
 0xa2c   :  { %v787_v25 = vadd.f32 %v786_v21, %v759_v57  ;;  %v2122_v57 = vld [vmem:[#allocation4 + $0x18] sm:$0xff] }
 0xa2e   :  { %v789_v59 = vpack.c.bf16 %v787_v25, %v785_v58 }
 0xa30   :  { %791 = vrot.lane.b32.xlu2 %v789_v59, %s2440_s4  ;;  %856 = vrot.lane.b32.xlu0 %v789_v59, %s2442_s20 }
 0xa31   :  { %858 = vrot.lane.b32.xlu1 %v789_v59, %s2441_s24 }
 0xa8a   :  { %v792_v60 = vpop.permute.xlu2 %791 }
 0xa8b   :  { %v797_v22 = vsel %vm366_vm15, %v792_v60, 0 }
 0xa8c   :  { %806 = vmatpush.bf16.xpose.msrb.mxu0 %v797_v22 }
 0xa93   :  { %1847 = vmatmul.msk.bf16.vlgmr.msrb.gmra.mxu0 %vm366_vm15, %v789_v59 }
 0xa94   :  { %961 = vmatpush.bf16.msra.mxu0 %v2122_v57 }
 0xaa2   :  { %v857_v63 = vpop.permute.xlu0 %856 }
 0xaa3   :  { %v859_v61 = vpop.permute.xlu1 %858 }
 0xaa4   :  { %v864_v62 = vsel %vm366_vm15, %v859_v61, 0 }
 0xaa5   :  { %873 = vmatpush.bf16.xpose.msra.mxu1 %v864_v62 }
 0xaac   :  { %1849 = vmatmul.msk.bf16.vlgmr.msra.gmra.mxu1 %vm366_vm15, %v857_v63 }
 0xb10   :  { %v808_v0 = vpop.f32.mrf.mxu0 }
 0xb11   :  { %v809_v1 = vadd.f32 %v808_v0, %v2651_v35 }
 0xb13   :  { %v813_v2 = vsel %vm366_vm15, %v809_v1, -inf }
 0xb14   :  { %814 = vmax.xlane.f32.xlu2 %v813_v2 }
 0xb18   :  { %v810_v6 = vpop.f32.mrf.mxu0 }
 0xb19   :  { %v811_v7 = vadd.f32 %v810_v6, %v2658_v39 }
 0xb1b   :  { %v816_v11 = vsel %vm366_vm15, %v811_v7, -inf }
 0xb29   :  { %v875_v3 = vpop.f32.mrf.mxu1 }
 0xb2a   :  { %v876_v4 = vadd.f32 %v875_v3, %v2651_v35  ;;  %v939_v3 = vperm.slane %v2726_v56, 1 }
 0xb2c   :  { %v880_v5 = vsel %vm366_vm15, %v876_v4, -inf }
 0xb2d   :  { %881 = vmax.xlane.f32.xlu0 %v880_v5 }
 0xb31   :  { %v877_v8 = vpop.f32.mrf.mxu1 }
 0xb32   :  { %v878_v9 = vadd.f32 %v877_v8, %v2658_v39 }
 0xb34   :  { %v883_v10 = vsel %vm366_vm15, %v878_v9, -inf }
 0xb35   :  { %884 = vmax.xlane.f32.xlu1 %v883_v10  ;;  %817 = vmax.xlane.f32.xlu0 %v816_v11 }
 0xb49   :  { %903 = vrot.lane.b32.xlu0 %v789_v59, %s2443_s2 }
 0xb87   :  { %v815_v12 = vpop.xlane.xlu2 %814 }
 0xb88   :  { %v819_v14 = vsub.f32 %v809_v1, %v815_v12 }
 0xb8a   :  { %v821_v18 = vmul.f32 1.442695, %v819_v14 }
 0xba0   :  { %v882_v13 = vpop.xlane.xlu0 %881 }
 0xba1   :  { %v886_v35 = vsub.f32 %v876_v4, %v882_v13 }
 0xba3   :  { %v888_v15 = vmul.f32 1.442695, %v886_v35 }
 0xba5   :  { %2244 = vpow2.f32 %v888_v15 }
 0xba6   :  { %2246 = vpow2.f32 %v821_v18 }
 0xba8   :  { %v885_v19 = vpop.xlane.xlu1 %884  ;;  %v818_v23 = vpop.xlane.xlu0 %817 }
 0xba9   :  { %v887_v24 = vsub.f32 %v878_v9, %v885_v19  ;;  %v820_v27 = vsub.f32 %v811_v7, %v818_v23 }
 0xbab   :  { %v2245_v26 = vpop.eup %2244  ;;  %v890_v39 = vmul.f32 1.442695, %v887_v24  ;;  %v823_v29 = vmul.f32 1.442695, %v820_v27 }
 0xbac   :  { %v892_v28 = vsel %vm366_vm15, %v2245_v26, 0.0  ;;  %v2247_v30 = vpop.eup %2246 }
 0xbad   :  { %2248 = vpow2.f32 %v890_v39  ;;  %893 = vadd.xlane.f32.xlu1 %v892_v28  ;;  %v825_v32 = vsel %vm366_vm15, %v2247_v30, 0.0  ;;  %v2123_v28 = vld [vmem:[#allocation6 + $0x10] sm:$0xff] }
 0xbae   :  { %2250 = vpow2.f32 %v823_v29 }
 0xbb3   :  { %v2249_v20 = vpop.eup %2248 }
 0xbb4   :  { %v895_v31 = vsel %vm366_vm15, %v2249_v20, 0.0  ;;  %v2251_v33 = vpop.eup %2250 }
 0xbb5   :  { %896 = vadd.xlane.f32.xlu2 %v895_v31  ;;  %826 = vadd.xlane.f32.xlu1 %v825_v32  ;;  %v828_v36 = vsel %vm366_vm15, %v2251_v33, 0.0 }
 0xbbb   :  { %v904_v34 = vpop.permute.xlu0 %903 }
 0xbbc   :  { %916 = vmatpush.bf16.msrb.mxu2 %v904_v34 }
 0xbbd   :  { %829 = vadd.xlane.f32.xlu2 %v828_v36 }
 0xbce   :  { %836 = vrot.lane.b32.xlu1 %v789_v59, %s2428_s26  ;;  %v2121_v59 = vld [vmem:[#allocation4 + $0x10] sm:$0xff] }
 0xbcf   :  { %962 = vmatpush.bf16.msra.mxu0 %v2121_v59  ;;  %v2127_v59 = vld [vmem:[%s2905_s9 + $0x30] sm:$0xff] }
 0xc20   :  { %v894_v37 = vpop.xlane.xlu1 %893 }
 0xc21   :  { %2252 = vrcp.f32 %v894_v37 }
 0xc27   :  { %v2253_v40 = vpop.eup %2252 }
 0xc28   :  { %v897_v38 = vpop.xlane.xlu2 %896  ;;  %v900_v42 = vmul.f32 %v2253_v40, %v2245_v26  ;;  %v827_v47 = vpop.xlane.xlu1 %826 }
 0xc29   :  { %2254 = vrcp.f32 %v897_v38 }
 0xc2f   :  { %v2255_v41 = vpop.eup %2254 }
 0xc30   :  { %v901_v44 = vmul.f32 %v2255_v41, %v2249_v20  ;;  %v830_v46 = vpop.xlane.xlu2 %829 }
 0xc31   :  { %2256 = vrcp.f32 %v830_v46  ;;  %v1015_v46 = vperm.slane %v2726_v56, 2 }
 0xc32   :  { %v902_v45 = vpack.c.bf16 %v901_v44, %v900_v42  ;;  %2258 = vrcp.f32 %v827_v47 }
 0xc34   :  { %1850 = vmatmul.msk.bf16.vlgmr.msrb.gmra.mxu2 %vm366_vm15, %v902_v45 }
 0xc37   :  { %v2257_v48 = vpop.eup %2256 }
 0xc38   :  { %v2259_v49 = vpop.eup %2258  ;;  %v834_v50 = vmul.f32 %v2257_v48, %v2251_v33 }
 0xc39   :  { %v833_v51 = vmul.f32 %v2259_v49, %v2247_v30 }
 0xc3b   :  { %v835_v55 = vpack.c.bf16 %v834_v50, %v833_v51  ;;  %v1018_v50 = vperm.slane %v2726_v56, 3 }
 0xc40   :  { %v837_v54 = vpop.permute.xlu1 %836 }
 0xc41   :  { %849 = vmatpush.bf16.msra.mxu3 %v837_v54 }
 0xc44   :  { %1848 = vmatmul.msk.bf16.vlgmr.msra.gmra.mxu3 %vm366_vm15, %v835_v55 }
 0xcb7   :  { %v918_v21 = vpop.f32.mrf.mxu2 }
 0xcbf   :  { %v920_v58 = vpop.f32.mrf.mxu2 }
 0xcc0   :  { %v2205_v25 = vpack.i.bf16 %v920_v58, %v918_v21 }
 0xcc2   :  { %2206 = vrot.lane.b32.xlu2 %v2205_v25, %s2444_s6  ;;  %v2128_v25 = vld [vmem:[%s2905_s9 + $0x38] sm:$0xff] }
 0xcc3   :  { %1117 = vmatpush.bf16.msrb.mxu1 %v2128_v25 }
 0xcc7   :  { %v851_v60 = vpop.f32.mrf.mxu3  ;;  %1118 = vmatpush.bf16.msrb.mxu1 %v2127_v59 }
 0xccf   :  { %v853_v63 = vpop.f32.mrf.mxu3 }
 0xd1c   :  { %v2207_v22 = vpop.permute.xlu2 %2206 }
 0xd1d   :  { %v2209_v61 = vunpack.i.h.bf16 %v2207_v22  ;;  %v2208_v62 = vunpack.i.l.bf16 %v2207_v22  ;;  %v2125_v22 = vld [vmem:[%s2905_s9 + $0x20] sm:$0xff] }
 0xd1f   :  { %v932_v0 = vsel %vm366_vm15, %v853_v63, %v2209_v61  ;;  %v931_v1 = vsel %vm366_vm15, %v851_v60, %v2208_v62  ;;  %v2126_v60 = vld [vmem:[%s2905_s9 + $0x28] sm:$0xff]  ;;  %v1027_v61 = vperm.slane %v2726_v56, 4 }
 0xd20   :  { %v938_v2 = vpack.c.bf16 %v932_v0, %v931_v1  ;;  %1119 = vmatpush.bf16.msrb.mxu1 %v2126_v60  ;;  %v1180_v60 = vshrl.u32 %v151_v16, 7 }
 0xd22   :  { %1859 = vmatmul.msk.bf16.vlgmr.msra.gmra.mxu0 %vm266_vm6, %v938_v2  ;;  %vm1183_vm12 = vcmp.lt.s32.totalorder %v1180_v60, 2 }
 0xd24   :  { %1120 = vmatpush.bf16.msrb.mxu1 %v2125_v22 }
 0xd9f   :  { %v964_v4 = vpop.f32.mrf.mxu0 }
 0xda0   :  { %v965_v5 = vadd.f32 %v964_v4, %v939_v3 }
 0xda2   :  { %v969_v6 = vadd.f32 %v965_v5, %v2719_v52 }
 0xda4   :  { %v971_v7 = vsel %vm266_vm6, %v969_v6, 0.0 }
 0xda5   :  { %972 = vadd.xlane.f32.xlu0 %v971_v7 }
 0xda7   :  { %v966_v8 = vpop.f32.mrf.mxu0 }
 0xda8   :  { %v967_v9 = vadd.f32 %v966_v8, %v939_v3 }
 0xdaa   :  { %v970_v10 = vadd.f32 %v967_v9, %v2721_v53  ;;  %v2124_v53 = vld [vmem:[#allocation6 + $0x18] sm:$0xff] }
 0xdab   :  { %1049 = vmatpush.bf16.msrb.mxu3 %v2124_v53 }
 0xdac   :  { %v974_v11 = vsel %vm266_vm6, %v970_v10, 0.0 }
 0xdad   :  { %975 = vadd.xlane.f32.xlu1 %v974_v11 }
 0xdaf   :  { %1050 = vmatpush.bf16.msrb.mxu3 %v2123_v28 }
 0xe18   :  { %v973_v12 = vpop.xlane.xlu0 %972 }
 0xe19   :  { %v977_v13 = vmul.f32 %v973_v12, %v2615_v43 }
 0xe1b   :  { %v979_v35 = vsub.f32 %v969_v6, %v977_v13 }
 0xe1d   :  { %v981_v14 = vmul.f32 %v979_v35, %v979_v35 }
 0xe1f   :  { %v983_v15 = vsel %vm266_vm6, %v981_v14, 0.0 }
 0xe20   :  { %v976_v18 = vpop.xlane.xlu1 %975  ;;  %984 = vadd.xlane.f32.xlu2 %v983_v15 }
 0xe21   :  { %v978_v52 = vmul.f32 %v976_v18, %v2615_v43 }
 0xe23   :  { %v980_v19 = vsub.f32 %v970_v10, %v978_v52 }
 0xe25   :  { %v982_v23 = vmul.f32 %v980_v19, %v980_v19 }
 0xe27   :  { %v986_v24 = vsel %vm266_vm6, %v982_v23, 0.0 }
 0xe28   :  { %987 = vadd.xlane.f32.xlu0 %v986_v24  ;;  %v1085_v24 = vperm.slane %v2726_v56, 5 }
 0xe93   :  { %v985_v26 = vpop.xlane.xlu2 %984 }
 0xe94   :  { %v989_v39 = vmul.f32 %v985_v26, %v2615_v43 }
 0xe96   :  { %v991_v27 = vadd.f32 1e-12, %v989_v39 }
 0xe98   :  { %2260 = vrsqrt.f32 %v991_v27  ;;  %vm999_vm0 = vweird.f32 %v991_v27 }
 0xe9b   :  { %v988_v29 = vpop.xlane.xlu0 %987 }
 0xe9c   :  { %v990_v30 = vmul.f32 %v988_v29, %v2615_v43 }
 0xe9e   :  { %v2261_v20 = vpop.eup %2260  ;;  %v992_v31 = vadd.f32 1e-12, %v990_v30 }
 0xe9f   :  { %v994_v32 = vmul.f32 %v2261_v20, %v991_v27  ;;  %vm1000_vm14 = vweird.f32 %v2261_v20 }
 0xea0   :  { %2262 = vrsqrt.f32 %v992_v31  ;;  %vm1001_vm1 = vmor %vm999_vm0, %vm1000_vm14  ;;  %vm1009_vm3 = vweird.f32 %v992_v31 }
 0xea1   :  { %v995_v33 = vmul.f32 %v2261_v20, %v994_v32 }
 0xea3   :  { %v996_v34 = vmul.f32 0.5, %v995_v33 }
 0xea5   :  { %v997_v36 = vsub.f32 1.5, %v996_v34 }
 0xea6   :  { %v2263_v37 = vpop.eup %2262 }
 0xea7   :  { %v998_v38 = vmul.f32 %v2261_v20, %v997_v36  ;;  %v1004_v40 = vmul.f32 %v2263_v37, %v992_v31  ;;  %vm1010_vm2 = vweird.f32 %v2263_v37 }
 0xea8   :  { %vm1011_vm4 = vmor %vm1009_vm3, %vm1010_vm2 }
 0xea9   :  { %v1005_v41 = vmul.f32 %v2263_v37, %v1004_v40  ;;  %v1002_v42 = vsel %vm1001_vm1, %v2261_v20, %v998_v38 }
 0xeaa   :  { %v1013_v47 = vmul.f32 %v1002_v42, %v979_v35 }
 0xeab   :  { %v1006_v44 = vmul.f32 0.5, %v1005_v41 }
 0xeac   :  { %v1016_v51 = vmul.f32 %v1015_v46, %v1013_v47 }
 0xead   :  { %v1007_v45 = vsub.f32 1.5, %v1006_v44 }
 0xeae   :  { %v1019_v57 = vadd.f32 %v1018_v50, %v1016_v51 }
 0xeaf   :  { %v1008_v48 = vmul.f32 %v2263_v37, %v1007_v45 }
 0xeb1   :  { %v1012_v49 = vsel %vm1011_vm4, %v2263_v37, %v1008_v48 }
 0xeb2   :  { %v1014_v54 = vmul.f32 %v1012_v49, %v980_v19  ;;  %v2130_v49 = vld [vmem:[#allocation9 + $0x8] sm:$0xff] }
 0xeb3   :  { %1232 = vmatpush.bf16.msrb.mxu0 %v2130_v49  ;;  %v2145_v49 = vld [vmem:[#allocation10 + $0x30] sm:$0xff] }
 0xeb4   :  { %v1017_v55 = vmul.f32 %v1015_v46, %v1014_v54 }
 0xeb6   :  { %v1020_v21 = vadd.f32 %v1018_v50, %v1017_v55 }
 0xeb8   :  { %v1026_v58 = vpack.c.bf16 %v1020_v21, %v1019_v57 }
 0xeba   :  { %1868 = vmatmul.msk.bf16.vlgmr.msrb.gmra.mxu3 %vm266_vm6, %v1026_v58 }
 0xf3d   :  { %v1052_v62 = vpop.f32.mrf.mxu3 }
 0xf3e   :  { %v1053_v63 = vadd.f32 %v1052_v62, %v1027_v61  ;;  %v1181_v62 = vmul.u32 8, %v1180_v60  ;;  %v2150_v60 = vld [vmem:[#allocation10 + $0x58] sm:$0xff] }
 0xf40   :  { %v1059_v0 = vmul.f32 0.044715, %v1053_v63  ;;  %v1057_v14 = vmul.f32 0.5, %v1053_v63  ;;  %vm1182_vm11 = vcmp.eq.s32.totalorder %v2596_v17, %v1181_v62 }
 0xf41   :  { %vm1184_vm14 = vmand %vm1182_vm11, %vm1183_vm12 }
 0xf42   :  { %v1061_v1 = vmul.f32 %v1059_v0, %v1053_v63 }
 0xf44   :  { %v1063_v2 = vmul.f32 %v1061_v1, %v1053_v63  ;;  %v1173_v1 = vperm.slane %v2726_v56, 6 }
 0xf45   :  { %v1054_v3 = vpop.f32.mrf.mxu3 }
 0xf46   :  { %v1065_v4 = vadd.f32 %v1063_v2, %v1053_v63  ;;  %v1055_v5 = vadd.f32 %v1054_v3, %v1027_v61 }
 0xf48   :  { %v1060_v6 = vmul.f32 0.044715, %v1055_v5  ;;  %v1067_v7 = vmul.f32 0.7978846, %v1065_v4  ;;  %v1058_v15 = vmul.f32 0.5, %v1055_v5 }
 0xf4a   :  { %v1062_v8 = vmul.f32 %v1060_v6, %v1055_v5  ;;  %2264 = vtanh.f32 %v1067_v7  ;;  %v2445_v7 = vmov 0.0  }
 0xf4c   :  { %v1064_v9 = vmul.f32 %v1062_v8, %v1055_v5  ;;  %v1894_v8 = vsel %vm1184_vm14, 1.0, %v2445_v7  ;;  %v2148_v7 = vld [vmem:[#allocation10 + $0x48] sm:$0xff] }
 0xf4e   :  { %v1066_v10 = vadd.f32 %v1064_v9, %v1055_v5  ;;  %v1176_v5 = vperm.slane %v2726_v56, 7  ;;  %v1923_v56 = vld [vmem:[%s2908_s12 + $0x20] sm:$0xf] }
 0xf50   :  { %v1068_v11 = vmul.f32 0.7978846, %v1066_v10  ;;  %v2265_v12 = vpop.eup %2264 }
 0xf51   :  { %v1071_v13 = vadd.f32 1.0, %v2265_v12  ;;  %v1187_v12 = vpack.c.bf16 %v1894_v8, %v1894_v8  ;;  %v2164_v8 = vld [vmem:[#allocation10 + $0xc8] sm:$0xff] }
 0xf52   :  { %2266 = vtanh.f32 %v1068_v11 }
 0xf53   :  { %v1073_v52 = vmul.f32 %v1071_v13, %v1057_v14  ;;  %v2129_v13 = vld [vmem:[#allocation9] sm:$0xff] }
 0xf54   :  { %1233 = vmatpush.bf16.msrb.mxu0 %v2129_v13  ;;  %v2156_v13 = vld [vmem:[#allocation10 + $0x88] sm:$0xff] }
 0xf58   :  { %v2267_v35 = vpop.eup %2266 }
 0xf59   :  { %v1072_v18 = vadd.f32 1.0, %v2267_v35 }
 0xf5b   :  { %v1074_v19 = vmul.f32 %v1072_v18, %v1058_v15  ;;  %v2137_v15 = vld [vmem:[%s2908_s12 + $0x2c] sm:$0xf0]  ;;  %v1931_v18 = vld [vmem:[%s2908_s12 + $0x28] sm:$0xf] }
 0xf5d   :  { %v1084_v23 = vpack.c.bf16 %v1074_v19, %v1073_v52  ;;  %v1924_v52 = vor.u32 %v2137_v15, %v1923_v56  ;;  %v2138_v19 = vld [vmem:[%s2908_s12 + $0x34] sm:$0xf0]  ;;  %v2177_v56 = vld [vmem:[%s2910_s14 + $0x30] sm:$0xff]  ;;  %v2176_v15 = vld [vmem:[%s2910_s14 + $0x28] sm:$0xff] }
 0xf5f   :  { %1893 = vmatmul.msk.bf16.vlgmr.msrb.gmra.mxu1 %vm681_vm7, %v1084_v23  ;;  %v2135_v23 = vld [vmem:[%s2908_s12 + $0x24] sm:$0xf]  ;;  %1302 = vmatpush.bf16.msra.mxu3 %v1924_v52  ;;  %v148_v52 = vld [vmem:[%s2901_s5 + $0x18] sm:$0xff] }
 0xfdc   :  { %v1122_v53 = vpop.f32.mrf.mxu1 }
 0xfdd   :  { %v1123_v26 = vadd.f32 %v1122_v53, %v1085_v24  ;;  %v1932_v53 = vor.u32 %v2138_v19, %v1931_v18  ;;  %v146_v18 = vld [vmem:[%s2901_s5 + $0x8] sm:$0xff] }
 0xfde   :  { %v1250_v19 = vperm.slane %v146_v18, 5 }
 0xfdf   :  { %v1127_v39 = vadd.f32 %v1123_v26, %v1019_v57 }
 0xfe1   :  { %v1129_v27 = vsel %vm266_vm6, %v1127_v39, 0.0 }
 0xfe2   :  { %1130 = vadd.xlane.f32.xlu0 %v1129_v27  ;;  %v1933_v27 = vld [vmem:[%s2908_s12 + $0x38] sm:$0xf0] }
 0xfe4   :  { %v1124_v28 = vpop.f32.mrf.mxu1 }
 0xfe5   :  { %v1125_v29 = vadd.f32 %v1124_v28, %v1085_v24  ;;  %v1925_v24 = vld [vmem:[%s2908_s12 + $0x30] sm:$0xf0] }
 0xfe6   :  { %v1928_v26 = vor.u32 %v2135_v23, %v1925_v24  ;;  %v1252_v23 = vperm.slane %v148_v52, 5  ;;  %v147_v24 = vld [vmem:[%s2901_s5 + $0x10] sm:$0xff] }
 0xfe7   :  { %v1128_v30 = vadd.f32 %v1125_v29, %v1020_v21  ;;  %v1907_v29 = vld [vmem:[%s2908_s12] sm:$0xf] }
 0xfe8   :  { %1315 = vmatpush.bf16.msra.mxu1 %v1928_v26 }
 0xfe9   :  { %v1132_v20 = vsel %vm266_vm6, %v1128_v30, 0.0 }
 0xfea   :  { %1133 = vadd.xlane.f32.xlu1 %v1132_v20  ;;  %v1915_v20 = vld [vmem:[%s2908_s12 + $0x8] sm:$0xf] }
0x1055   :  { %v1131_v31 = vpop.xlane.xlu0 %1130 }
0x1056   :  { %v1135_v32 = vmul.f32 %v1131_v31, %v2615_v43 }
0x1058   :  { %v1137_v33 = vsub.f32 %v1127_v39, %v1135_v32  ;;  %v2136_v39 = vld [vmem:[%s2908_s12 + $0x2c] sm:$0xf]  ;;  %v2134_v32 = vld [vmem:[%s2908_s12 + $0x14] sm:$0xf0] }
0x1059   :  { %v1936_v28 = vor.u32 %v2136_v39, %v1933_v27 }
0x105a   :  { %v1139_v34 = vmul.f32 %v1137_v33, %v1137_v33 }
0x105b   :  { %1341 = vmatpush.bf16.msra.mxu0 %v1936_v28 }
0x105c   :  { %v1141_v36 = vsel %vm266_vm6, %v1139_v34, 0.0  ;;  %v1909_v34 = vld [vmem:[%s2908_s12 + $0x10] sm:$0xf0] }
0x105d   :  { %v1134_v37 = vpop.xlane.xlu1 %1133  ;;  %1142 = vadd.xlane.f32.xlu0 %v1141_v36  ;;  %v1916_v36 = vor.u32 %v2134_v32, %v1915_v20 }
0x105e   :  { %v1136_v38 = vmul.f32 %v1134_v37, %v2615_v43 }
0x1060   :  { %v1138_v40 = vsub.f32 %v1128_v30, %v1136_v38  ;;  %v2133_v30 = vld [vmem:[%s2908_s12 + $0xc] sm:$0xf0]  ;;  %v2132_v38 = vld [vmem:[%s2908_s12 + $0xc] sm:$0xf] }
0x1061   :  { %v1908_v31 = vor.u32 %v2133_v30, %v1907_v29  ;;  %v1251_v29 = vperm.slane %v147_v24, 5 }
0x1062   :  { %v1140_v41 = vmul.f32 %v1138_v40, %v1138_v40 }
0x1063   :  { %1303 = vmatpush.bf16.msra.mxu3 %v1908_v31 }
0x1064   :  { %v1144_v42 = vsel %vm266_vm6, %v1140_v41, 0.0 }
0x1065   :  { %1145 = vadd.xlane.f32.xlu2 %v1144_v42  ;;  %v2154_v42 = vld [vmem:[#allocation10 + $0x78] sm:$0xff] }
0x10d0   :  { %v1143_v44 = vpop.xlane.xlu0 %1142 }
0x10d1   :  { %v1147_v45 = vmul.f32 %v1143_v44, %v2615_v43  ;;  %v2170_v44 = vld [vmem:[#allocation10 + $0xf8] sm:$0xff] }
0x10d3   :  { %v1149_v46 = vadd.f32 1e-12, %v1147_v45  ;;  %v2146_v45 = vld [vmem:[#allocation10 + $0x38] sm:$0xff] }
0x10d4   :  { %1613 = vmatpush.bf16.msrb.mxu3 %v2146_v45 }
0x10d5   :  { %2268 = vrsqrt.f32 %v1149_v46  ;;  %vm1157_vm7 = vweird.f32 %v1149_v46 }
0x10d8   :  { %v1146_v47 = vpop.xlane.xlu2 %1145  ;;  %1614 = vmatpush.bf16.msrb.mxu3 %v2145_v49  ;;  %v2174_v49 = vld [vmem:[%s2910_s14 + $0x18] sm:$0xff] }
0x10d9   :  { %v1148_v48 = vmul.f32 %v1146_v47, %v2615_v43  ;;  %v2169_v47 = vld [vmem:[#allocation10 + $0xf0] sm:$0xff] }
0x10db   :  { %v2269_v50 = vpop.eup %2268  ;;  %v1150_v51 = vadd.f32 1e-12, %v1148_v48  ;;  %v2162_v48 = vld [vmem:[#allocation10 + $0xb8] sm:$0xff] }
0x10dc   :  { %v1152_v54 = vmul.f32 %v2269_v50, %v1149_v46  ;;  %vm1158_vm5 = vweird.f32 %v2269_v50  ;;  %v2153_v46 = vld [vmem:[#allocation10 + $0x70] sm:$0xff] }
0x10dd   :  { %2270 = vrsqrt.f32 %v1150_v51  ;;  %vm1159_vm8 = vmor %vm1157_vm7, %vm1158_vm5  ;;  %vm1167_vm10 = vweird.f32 %v1150_v51 }
0x10de   :  { %v1153_v55 = vmul.f32 %v2269_v50, %v1152_v54  ;;  %v2168_v54 = vld [vmem:[#allocation10 + $0xe8] sm:$0xff] }
0x10e0   :  { %v1154_v57 = vmul.f32 0.5, %v1153_v55  ;;  %v2144_v55 = vld [vmem:[#allocation10 + $0x28] sm:$0xff] }
0x10e1   :  { %1615 = vmatpush.bf16.msrb.mxu3 %v2144_v55 }
0x10e2   :  { %v1155_v21 = vsub.f32 1.5, %v1154_v57  ;;  %v2160_v57 = vld [vmem:[#allocation10 + $0xa8] sm:$0xff] }
0x10e3   :  { %v2271_v58 = vpop.eup %2270 }
0x10e4   :  { %v1156_v25 = vmul.f32 %v2269_v50, %v1155_v21  ;;  %v1162_v59 = vmul.f32 %v2271_v58, %v1150_v51  ;;  %vm1168_vm9 = vweird.f32 %v2271_v58  ;;  %v2152_v51 = vld [vmem:[#allocation10 + $0x68] sm:$0xff]  ;;  %v2151_v21 = vld [vmem:[#allocation10 + $0x60] sm:$0xff] }
0x10e5   :  { %vm1169_vm13 = vmor %vm1167_vm10, %vm1168_vm9 }
0x10e6   :  { %v1163_v22 = vmul.f32 %v2271_v58, %v1162_v59  ;;  %v1160_v61 = vsel %vm1159_vm8, %v2269_v50, %v1156_v25  ;;  %v2161_v50 = vld [vmem:[#allocation10 + $0xb0] sm:$0xff]  ;;  %v2143_v25 = vld [vmem:[#allocation10 + $0x20] sm:$0xff] }
0x10e7   :  { %v1171_v0 = vmul.f32 %v1160_v61, %v1137_v33  ;;  %v2131_v33 = vld [vmem:[%s2908_s12 + $0x4] sm:$0xf]  ;;  %1616 = vmatpush.bf16.msrb.mxu3 %v2143_v25  ;;  %v2142_v61 = vld [vmem:[#allocation10 + $0x18] sm:$0xff] }
0x10e8   :  { %v1164_v43 = vmul.f32 0.5, %v1163_v22  ;;  %v1912_v37 = vor.u32 %v2131_v33, %v1909_v34  ;;  %v2159_v59 = vld [vmem:[#allocation10 + $0xa0] sm:$0xff]  ;;  %v2166_v22 = vld [vmem:[#allocation10 + $0xd8] sm:$0xff] }
0x10e9   :  { %v1174_v16 = vmul.f32 %v1173_v1, %v1171_v0  ;;  %v2149_v0 = vld [vmem:[#allocation10 + $0x50] sm:$0xff] }
0x10ea   :  { %v1165_v63 = vsub.f32 1.5, %v1164_v43  ;;  %1316 = vmatpush.bf16.msra.mxu1 %v1912_v37  ;;  %v2850_v43 = vld [vmem:[%s2901_s5] sm:$0xff] }
0x10eb   :  { %v1177_v9 = vadd.f32 %v1176_v5, %v1174_v16  ;;  %v1210_v62 = vperm.slane %v2850_v43, 4  ;;  %1617 = vmatpush.bf16.msrb.mxu3 %v2142_v61  ;;  %v1249_v28 = vperm.slane %v2850_v43, 5 }
0x10ec   :  { %v1166_v2 = vmul.f32 %v2271_v58, %v1165_v63  ;;  %v2158_v63 = vld [vmem:[#allocation10 + $0x98] sm:$0xff] }
0x10ee   :  { %v1170_v3 = vsel %vm1169_vm13, %v2271_v58, %v1166_v2  ;;  %1626 = vmatpush.bf16.msrb.mxu1 %v2154_v42  ;;  %v2167_v58 = vld [vmem:[#allocation10 + $0xe0] sm:$0xff] }
0x10ef   :  { %v1172_v4 = vmul.f32 %v1170_v3, %v1138_v40  ;;  %v1917_v40 = vld [vmem:[%s2908_s12 + $0x18] sm:$0xf0]  ;;  %v2141_v3 = vld [vmem:[#allocation10 + $0x10] sm:$0xff] }
0x10f0   :  { %v1920_v41 = vor.u32 %v2132_v38, %v1917_v40  ;;  %1618 = vmatpush.bf16.msrb.mxu3 %v2141_v3 }
0x10f1   :  { %v1175_v6 = vmul.f32 %v1173_v1, %v1172_v4  ;;  %v2165_v1 = vld [vmem:[#allocation10 + $0xd0] sm:$0xff] }
0x10f2   :  { %1342 = vmatpush.bf16.msra.mxu0 %v1920_v41  ;;  %1627 = vmatpush.bf16.msrb.mxu1 %v2153_v46 }
0x10f3   :  { %v1178_v10 = vadd.f32 %v1176_v5, %v1175_v6 }
0x10f5   :  { %v1188_v11 = vpack.c.bf16 %v1178_v10, %v1177_v9  ;;  %v2157_v9 = vld [vmem:[#allocation10 + $0x90] sm:$0xff]  ;;  %v2147_v10 = vld [vmem:[#allocation10 + $0x40] sm:$0xff] }
0x10f6   :  { %1628 = vmatpush.bf16.msrb.mxu1 %v2152_v51  ;;  %v2172_v51 = vld [vmem:[%s2910_s14 + $0x8] sm:$0xff] }
0x10f7   :  { %1199 = vmatpush.bf16.msra.mxu2 %v1188_v11  ;;  %v2163_v11 = vld [vmem:[#allocation10 + $0xc0] sm:$0xff] }
0x10fa   :  { %1895 = vmatmul.msk.bf16.vlgmr.msra.gmra.mxu2 %vm366_vm15, %v1187_v12  ;;  %1629 = vmatpush.bf16.msrb.mxu1 %v2151_v21  ;;  %v2140_v12 = vld [vmem:[#allocation10 + $0x8] sm:$0xff]  ;;  %v1420_v21 = vperm.slane %v2850_v43, 6 }
0x10fb   :  { %1328 = vmatpush.bf16.msrb.mxu2 %v1932_v53  ;;  %1619 = vmatpush.bf16.msrb.mxu3 %v2140_v12 }
0x10fe   :  { %1630 = vmatpush.bf16.msrb.mxu1 %v2150_v60 }
0x10ff   :  { %1329 = vmatpush.bf16.msrb.mxu2 %v1916_v36 }
0x1102   :  { %1631 = vmatpush.bf16.msrb.mxu1 %v2149_v0 }
0x1103   :  { %1639 = vmatpush.bf16.msra.mxu2 %v2162_v48  ;;  %v2175_v48 = vld [vmem:[%s2910_s14 + $0x20] sm:$0xff] }
0x1106   :  { %1632 = vmatpush.bf16.msrb.mxu1 %v2148_v7 }
0x1107   :  { %1640 = vmatpush.bf16.msra.mxu2 %v2161_v50  ;;  %v2173_v50 = vld [vmem:[%s2910_s14 + $0x10] sm:$0xff] }
0x110a   :  { %1633 = vmatpush.bf16.msrb.mxu1 %v2147_v10 }
0x110b   :  { %1641 = vmatpush.bf16.msra.mxu2 %v2160_v57 }
0x110f   :  { %1642 = vmatpush.bf16.msra.mxu2 %v2159_v59 }
0x1113   :  { %1643 = vmatpush.bf16.msra.mxu2 %v2158_v63 }
0x1117   :  { %1644 = vmatpush.bf16.msra.mxu2 %v2157_v9 }
0x111b   :  { %1645 = vmatpush.bf16.msra.mxu2 %v2156_v13 }
0x117d   :  { %v1201_v17 = vpop.f32.mrf.mxu2 }
0x117e   :  { %v1209_v35 = vpack.c.bf16 %v1201_v17, %v1201_v17  ;;  %v2139_v17 = vld [vmem:[#allocation10] sm:$0xff] }
0x117f   :  { %1620 = vmatpush.bf16.msrb.mxu3 %v2139_v17 }
0x1180   :  { %1904 = vmatmul.msk.bf16.vlgmr.msrb.gmra.mxu0 %vm266_vm6, %v1209_v35  ;;  %v2155_v35 = vld [vmem:[#allocation10 + $0x80] sm:$0xff] }
0x1181   :  { %1652 = vmatpush.bf16.msrb.mxu0 %v2170_v44  ;;  %1646 = vmatpush.bf16.msra.mxu2 %v2155_v35 }
0x1185   :  { %v1203_v14 = vpop.f32.mrf.mxu2  ;;  %1653 = vmatpush.bf16.msrb.mxu0 %v2169_v47 }
0x1186   :  { %v2178_v14 = vld [vmem:[%s2910_s14 + $0x38] sm:$0xff] }
0x1189   :  { %1654 = vmatpush.bf16.msrb.mxu0 %v2168_v54  ;;  %v2171_v54 = vld [vmem:[%s2910_s14] sm:$0xff] }
0x118d   :  { %1655 = vmatpush.bf16.msrb.mxu0 %v2167_v58 }
0x1191   :  { %1656 = vmatpush.bf16.msrb.mxu0 %v2166_v22 }
0x1195   :  { %1657 = vmatpush.bf16.msrb.mxu0 %v2165_v1 }
0x1199   :  { %1658 = vmatpush.bf16.msrb.mxu0 %v2164_v8 }
0x119d   :  { %1659 = vmatpush.bf16.msrb.mxu0 %v2163_v11 }
0x11fd   :  { %v1235_v2 = vpop.f32.mrf.mxu0 }
0x11fe   :  { %v1236_v4 = vadd.f32 %v1235_v2, %v1210_v62 }
0x1200   :  { %2272 = vtanh.f32 %v1236_v4  ;;  %v1683_v4 = vperm.slane %v2850_v43, 7 }
0x1205   :  { %v1237_v16 = vpop.f32.mrf.mxu0 }
0x1206   :  { %v2273_v5 = vpop.eup %2272 }
0x1207   :  { %v1248_v6 = vpack.c.bf16 %v2273_v5, %v2273_v5 }
0x1209   :  { %1937 = vmatmul.msk.bf16.vlgmr.msra.gmra.mxu3 %vm266_vm6, %v1248_v6  ;;  %1939 = vmatmul.msk.bf16.vlgmr.msrb.gmra.mxu2 %vm266_vm6, %v1248_v6 }
0x120a   :  { %1938 = vmatmul.msk.bf16.vlgmr.msra.gmra.mxu1 %vm266_vm6, %v1248_v6  ;;  %1940 = vmatmul.msk.bf16.vlgmr.msra.gmra.mxu0 %vm266_vm6, %v1248_v6 }
0x120b   :  { %1732 = vmatpush.bf16.msra.mxu3 %v2178_v14 }
0x120f   :  { %1733 = vmatpush.bf16.msra.mxu3 %v2177_v56 }
0x1213   :  { %1734 = vmatpush.bf16.msra.mxu3 %v2176_v15 }
0x1217   :  { %1735 = vmatpush.bf16.msra.mxu3 %v2175_v48 }
0x121b   :  { %1736 = vmatpush.bf16.msra.mxu3 %v2174_v49 }
0x121f   :  { %1737 = vmatpush.bf16.msra.mxu3 %v2173_v50 }
0x1223   :  { %1738 = vmatpush.bf16.msra.mxu3 %v2172_v51 }
0x1227   :  { %1739 = vmatpush.bf16.msra.mxu3 %v2171_v54 }
0x1287   :  { %v1318_v53 = vpop.f32.mrf.mxu1  ;;  %v1344_v26 = vpop.f32.mrf.mxu0 }
0x1288   :  { %v1319_v39 = vadd.f32 %v1318_v53, %v1250_v19  ;;  %v1345_v27 = vadd.f32 %v1344_v26, %v1252_v23 }
0x128a   :  { %v1349_v30 = vmax.f32 %v1319_v39, 0.0  ;;  %v1351_v20 = vmax.f32 %v1345_v27, 0.0 }
0x128c   :  { %v1417_v31 = vpack.c.bf16 %v1349_v30, %v1349_v30  ;;  %v1419_v32 = vpack.c.bf16 %v1351_v20, %v1351_v20  ;;  %v1305_v33 = vpop.f32.mrf.mxu3  ;;  %v1331_v34 = vpop.f32.mrf.mxu2 }
0x128d   :  { %v1306_v36 = vadd.f32 %v1305_v33, %v1249_v28  ;;  %v1332_v37 = vadd.f32 %v1331_v34, %v1251_v29 }
0x128e   :  { %1634 = vmatmul.bf16.vlgmr.msrb.gmra.mxu1 %v1417_v31  ;;  %1660 = vmatmul.bf16.vlgmr.msrb.gmra.mxu0 %v1419_v32 }
0x128f   :  { %v1348_v38 = vmax.f32 %v1306_v36, 0.0  ;;  %v1350_v40 = vmax.f32 %v1332_v37, 0.0  ;;  %v1320_v41 = vpop.f32.mrf.mxu1  ;;  %v1346_v42 = vpop.f32.mrf.mxu0 }
0x1291   :  { %v1416_v44 = vpack.c.bf16 %v1348_v38, %v1348_v38  ;;  %v1418_v45 = vpack.c.bf16 %v1350_v40, %v1350_v40 }
0x1293   :  { %1621 = vmatmul.bf16.vlgmr.msrb.gmra.mxu3 %v1416_v44  ;;  %1647 = vmatmul.bf16.vlgmr.msra.gmra.mxu2 %v1418_v45 }
0x1294   :  { %v1307_v46 = vpop.f32.mrf.mxu3  ;;  %v1333_v47 = vpop.f32.mrf.mxu2 }
0x130b   :  { %v1635_v55 = vpop.f32.mrf.mxu1  ;;  %v1661_v57 = vpop.f32.mrf.mxu0 }
0x1313   :  { %v1637_v58 = vpop.f32.mrf.mxu1  ;;  %v1663_v25 = vpop.f32.mrf.mxu0 }
0x1316   :  { %v1622_v59 = vpop.f32.mrf.mxu3  ;;  %v1648_v60 = vpop.f32.mrf.mxu2 }
0x1317   :  { %v1623_v22 = vadd.f32 %v1622_v59, %v1420_v21 }
0x1319   :  { %v1636_v61 = vadd.f32 %v1635_v55, %v1623_v22 }
0x131b   :  { %v1649_v62 = vadd.f32 %v1648_v60, %v1636_v61 }
0x131d   :  { %v1662_v63 = vadd.f32 %v1661_v57, %v1649_v62 }
0x131e   :  { %v1624_v0 = vpop.f32.mrf.mxu3  ;;  %v1650_v1 = vpop.f32.mrf.mxu2 }
0x131f   :  { %v1665_v2 = vmax.f32 %v1662_v63, 0.0 }
0x1321   :  { %v1682_v3 = vpack.c.bf16 %v1665_v2, %v1665_v2 }
0x1323   :  { %1740 = vmatmul.bf16.vlgmr.msra.gmra.mxu3 %v1682_v3 }
0x13a6   :  { %v1741_v16 = vpop.f32.mrf.mxu3 }
0x13a7   :  { %v1742_v5 = vadd.f32 %v1741_v16, %v1683_v4 }
0x13a9   :  { %1745 = vst [vmem:[%s2911_s15] sm:$0xff] %v1742_v5 }
0x13ae   :  { %v1743_v6 = vpop.f32.mrf.mxu3 }
0x13af   :  { %1750 = vsyncpa [#allocation3], 1 }
0x13b0   :  { %1751 = vsyncpa [#allocation5], 1 }
0x13b1   :  { %1752 = vsyncpa [#allocation8], 1 }
0x13b2   :  { %1753 = vsyncpa [#allocation11], 1 }

</bundles_post_ra>
